<compile_context>
chip_gen: v7x
topology: tpu7x:2x2x1
jax: 0.10.0
libtpu: 0.0.40
codegen_flags: <defaults>
</compile_context>

<pallas_src>
import jax
import jax.numpy as jnp
from jax.experimental import pallas as pl
from jax.experimental.pallas import tpu as pltpu

EPS = 1e-5
SLOPE = 0.2


def _make_fused_kernel(Cp, M, G, Ltot, taps, count):
    """Fused kernel: out = BN2(conv2(LReLU(BN1(conv1(x))))) + x.

    Layout: activations are (channels, lanes); the lane axis is the flattened,
    spatially zero-padded pixel index  flat = n*Hp*Wp + i*Wp + j , with G (128-aligned)
    guard lanes on each side so every 3x3 tap is a static, in-bounds lane slice.
    """
    inv_cnt = 1.0 / count

    def kernel(xg_ref, w1_ref, g1_ref, bt1_ref, w2_ref, g2_ref, bt2_ref,
               mask_ref, out_ref, h_ref, im_ref):
        valid = mask_ref[...] != 0.0                       # (1, M) bool, valid pixels

        def conv3x3(src_ref, w_ref):
            # Implicit im2col: 9 shifted lane-slices stacked on the sublane axis
            # (bf16), contracted in ONE deep-K (K = 9*Cp) MXU dot, f32 accumulate.
            for t, off in enumerate(taps):
                im_ref[t * Cp:(t + 1) * Cp, :] = (
                    src_ref[:, G + off:G + off + M].astype(jnp.bfloat16))
            return jnp.dot(w_ref[...], im_ref[...],
                           preferred_element_type=jnp.float32)

        def batchnorm(acc, g_ref, b_ref):
            # Training-mode BN (biased variance), two-pass over valid pixels only.
            am = jnp.where(valid, acc, 0.0)
            mean = jnp.sum(am, axis=1, keepdims=True) * inv_cnt      # (Cp, 1)
            cen = acc - mean
            cm = jnp.where(valid, cen, 0.0)
            var = jnp.sum(cm * cm, axis=1, keepdims=True) * inv_cnt  # (Cp, 1)
            return cen * jax.lax.rsqrt(var + EPS) * g_ref[...] + b_ref[...]

        # conv1 -> BN1 -> LeakyReLU   (conv bias omitted: cancelled by BN mean-sub)
        y = batchnorm(conv3x3(xg_ref, w1_ref), g1_ref, bt1_ref)
        y = jnp.where(y > 0, y, SLOPE * y)

        # Stage h (bf16) with guard lanes; zero ONLY the guards, not the interior.
        h_ref[:, :G] = jnp.zeros((Cp, G), jnp.bfloat16)
        h_ref[:, G + M:] = jnp.zeros((Cp, Ltot - G - M), jnp.bfloat16)
        h_ref[:, G:G + M] = jnp.where(valid, y, 0.0).astype(jnp.bfloat16)

        # conv2 -> BN2 -> residual add (center slice of xg == x at valid pixels)
        y2 = batchnorm(conv3x3(h_ref, w2_ref), g2_ref, bt2_ref)
        out_ref[...] = y2 + xg_ref[:, G:G + M]

    return kernel


def generator_residual_block(x, params):
    """x: (N, C, H, W) float32.  Returns x + block(x) (PyTorch forward semantics)."""
    N, C, H, W = x.shape
    Hp, Wp = H + 2, W + 2
    Lp = Hp * Wp                                   # flattened padded pixels per sample
    M_raw = N * Lp                                 # real flattened data width
    M = ((M_raw + 127) // 128) * 128               # lane-dense compute/output width
    G = ((Wp + 1 + 127) // 128) * 128              # 128-aligned guard, >= Wp+1
    Ltot = M + 2 * G                               # guarded buffer width
    Cp = ((C + 15) // 16) * 16                     # channels padded to bf16 sublane tile

    # Layout invariants (flagged in review: assert if constants ever change).
    assert G >= Wp + 1 and G % 128 == 0
    assert M % 128 == 0 and Ltot % 128 == 0 and Cp % 16 == 0

    # ---- wrapper-side layout plumbing (channel-major, lane-dense, guarded) ----
    xg = jnp.transpose(x, (1, 0, 2, 3))                              # (C, N, H, W)
    xg = jnp.pad(xg, ((0, Cp - C), (0, 0), (1, 1), (1, 1)))          # (Cp,N,Hp,Wp)
    xg = xg.reshape(Cp, M_raw)
    xg = jnp.pad(xg, ((0, 0), (G, Ltot - M_raw - G)))                # (Cp, Ltot)

    mask2d = jnp.zeros((Hp, Wp), jnp.float32).at[1:H + 1, 1:W + 1].set(1.0)
    mask = jnp.tile(mask2d.reshape(-1), N)
    mask = jnp.pad(mask, (0, M - M_raw)).reshape(1, M)               # valid pixels

    def prep_w(w):
        # (C,C,3,3) -> (Cp, 9*Cp) bf16: K axis ordered (tap, cin) to match im2col.
        wp = jnp.pad(w, ((0, Cp - C), (0, Cp - C), (0, 0), (0, 0)))
        return (jnp.transpose(wp, (0, 2, 3, 1))                      # (Cout,kh,kw,Cin)
                .reshape(Cp, 9 * Cp).astype(jnp.bfloat16))

    def prep_v(v):   # (C,) -> (Cp, 1) f32, zero-padded channels
        return jnp.pad(v, (0, Cp - C)).reshape(Cp, 1)

    w1 = prep_w(params["w1"])
    w2 = prep_w(params["w2"])
    # params["b1"] / params["b2"] intentionally unused: training-mode BN cancels them.
    g1, bt1 = prep_v(params["g1"]), prep_v(params["bt1"])
    g2, bt2 = prep_v(params["g2"]), prep_v(params["bt2"])

    taps = tuple((dh - 1) * Wp + (dw - 1) for dh in range(3) for dw in range(3))
    kernel = _make_fused_kernel(Cp, M, G, Ltot, taps, float(N * H * W))

    flops = int(2 * (2 * Cp * (9 * Cp) * M))                         # two convs
    bytes_accessed = int(Cp * Ltot * 4 + Cp * M * 4                  # xg in, out
                         + 2 * Cp * 9 * Cp * 2                       # bf16 weights
                         + M * 4 + 4 * Cp * 4)                       # mask, gamma/beta

    vspec = pl.BlockSpec(memory_space=pltpu.MemorySpace.VMEM)
    out_flat = pl.pallas_call(
        kernel,
        out_shape=jax.ShapeDtypeStruct((Cp, M), jnp.float32),
        in_specs=[vspec] * 8,
        out_specs=vspec,
        scratch_shapes=[pltpu.VMEM((Cp, Ltot), jnp.bfloat16),        # guarded h
                        pltpu.VMEM((9 * Cp, M), jnp.bfloat16)],      # im2col stack
        compiler_params=pltpu.CompilerParams(vmem_limit_bytes=32 * 1024 * 1024),
        cost_estimate=pl.CostEstimate(flops=flops, transcendentals=2 * Cp,
                                      bytes_accessed=bytes_accessed),
    )(xg, w1, g1, bt1, w2, g2, bt2, mask)

    # Drop padded channels / padding pixels, back to NCHW.
    out = out_flat[:C, :M_raw].reshape(C, N, Hp, Wp)[:, :, 1:H + 1, 1:W + 1]
    return jnp.transpose(out, (1, 0, 2, 3))


def _reference(x, params, conv_dtype):
    """Pure-JAX reference (training-mode BN).  conv_dtype=f32 gives the exact PyTorch
    f32 semantics; conv_dtype=bf16 mirrors the kernel's MXU operand precision."""
    def conv(h, w, b):
        _, _, Hh, Ww = h.shape
        hp = jnp.pad(h, ((0, 0), (0, 0), (1, 1), (1, 1))).astype(conv_dtype)
        wd = w.astype(conv_dtype)
        out = jnp.zeros(h.shape, jnp.float32)
        for dh in range(3):
            for dw in range(3):
                out = out + jnp.einsum(
                    "nihw,oi->nohw", hp[:, :, dh:dh + Hh, dw:dw + Ww], wd[:, :, dh, dw],
                    preferred_element_type=jnp.float32,
                    precision=jax.lax.Precision.HIGHEST)
        return out + b[None, :, None, None]

    def bn(y, g, bt):
        mean = jnp.mean(y, axis=(0, 2, 3), keepdims=True)
        var = jnp.mean((y - mean) ** 2, axis=(0, 2, 3), keepdims=True)
        return (y - mean) * jax.lax.rsqrt(var + EPS) * g[None, :, None, None] \
            + bt[None, :, None, None]

    h = conv(x, params["w1"], params["b1"])
    h = bn(h, params["g1"], params["bt1"])
    h = jnp.where(h > 0, h, SLOPE * h)
    h = conv(h, params["w2"], params["b2"])
    h = bn(h, params["g2"], params["bt2"])
    return x + h


if __name__ == "__main__":
    key = jax.random.PRNGKey(0)
    N, C, H, W = 2, 4, 16, 16
    ks = jax.random.split(key, 9)

    x = jax.random.normal(ks[0], (N, C, H, W), dtype=jnp.float32)
    params = dict(
        w1=0.1 * jax.random.normal(ks[1], (C, C, 3, 3), dtype=jnp.float32),
        b1=0.1 * jax.random.normal(ks[2], (C,), dtype=jnp.float32),
        g1=1.0 + 0.1 * jax.random.normal(ks[3], (C,), dtype=jnp.float32),
        bt1=0.1 * jax.random.normal(ks[4], (C,), dtype=jnp.float32),
        w2=0.1 * jax.random.normal(ks[5], (C, C, 3, 3), dtype=jnp.float32),
        b2=0.1 * jax.random.normal(ks[6], (C,), dtype=jnp.float32),
        g2=1.0 + 0.1 * jax.random.normal(ks[7], (C,), dtype=jnp.float32),
        bt2=0.1 * jax.random.normal(ks[8], (C,), dtype=jnp.float32),
    )

    out = jax.block_until_ready(generator_residual_block(x, params))

    # Tight structural check: reference with the same (bf16 operand, f32 accumulate)
    # matmul precision policy as the kernel.
    ref_matched = jax.block_until_ready(_reference(x, params, jnp.bfloat16))
    # Spec-level sanity check: exact f32 PyTorch semantics; tolerance absorbs the
    # deliberate bf16 MXU-operand rounding (~1e-2 after two BN normalizations).
    ref_f32 = jax.block_until_ready(_reference(x, params, jnp.float32))

    if out.shape != (N, C, H, W):
        raise AssertionError(f"bad output shape {out.shape}")
    if not jnp.allclose(out, ref_matched, rtol=2e-3, atol=2e-3):
        err = float(jnp.max(jnp.abs(out - ref_matched)))
        raise AssertionError(f"mismatch vs precision-matched reference (max abs err {err})")
    if not jnp.allclose(out, ref_f32, rtol=6e-2, atol=6e-2):
        err = float(jnp.max(jnp.abs(out - ref_f32)))
        raise AssertionError(f"mismatch vs f32 spec reference (max abs err {err})")

    print("KERNEL_OK")
</pallas_src>

<mosaic_0001>
module attributes {stable_mosaic.version = 11 : i64} {
  func.func @kernel(%arg0: memref<16x1024xf32, #tpu.memory_space<vmem>>, %arg1: memref<16x144xbf16, #tpu.memory_space<vmem>>, %arg2: memref<16x1xf32, #tpu.memory_space<vmem>>, %arg3: memref<16x1xf32, #tpu.memory_space<vmem>>, %arg4: memref<16x144xbf16, #tpu.memory_space<vmem>>, %arg5: memref<16x1xf32, #tpu.memory_space<vmem>>, %arg6: memref<16x1xf32, #tpu.memory_space<vmem>>, %arg7: memref<1x768xf32, #tpu.memory_space<vmem>>, %arg8: memref<16x768xf32, #tpu.memory_space<vmem>>, %arg9: memref<16x1024xbf16, #tpu.memory_space<vmem>>, %arg10: memref<144x768xbf16, #tpu.memory_space<vmem>>) attributes {dimension_semantics = [], scalar_prefetch = 0 : i64, scratch_operands = 2 : i64, tpu.core_type = #tpu.core_type<tc>} {
    %c0 = arith.constant 0 : index
    %c0_0 = arith.constant 0 : index
    %0 = vector.load %arg7[%c0, %c0_0] : memref<1x768xf32, #tpu.memory_space<vmem>>, vector<1x768xf32>
    %cst = arith.constant 0.000000e+00 : f32
    %1 = vector.broadcast %cst : f32 to vector<1x768xf32>
    %2 = arith.cmpf one, %0, %1 : vector<1x768xf32>
    %c0_1 = arith.constant 0 : index
    %c109 = arith.constant 109 : index
    %3 = vector.load %arg0[%c0_1, %c109] : memref<16x1024xf32, #tpu.memory_space<vmem>>, vector<16x768xf32>
    %4 = arith.truncf %3 : vector<16x768xf32> to vector<16x768xbf16>
    %c0_2 = arith.constant 0 : index
    %c0_3 = arith.constant 0 : index
    %5 = vector.load %arg10[%c0_2, %c0_3] : memref<144x768xbf16, #tpu.memory_space<vmem>>, vector<16x768xbf16>
    tpu.vector_store %arg10[%c0_2, %c0_3], %4 {strides = array<i32>} : memref<144x768xbf16, #tpu.memory_space<vmem>>, vector<16x768xbf16>,
    %c0_4 = arith.constant 0 : index
    %c110 = arith.constant 110 : index
    %6 = vector.load %arg0[%c0_4, %c110] : memref<16x1024xf32, #tpu.memory_space<vmem>>, vector<16x768xf32>
    %7 = arith.truncf %6 : vector<16x768xf32> to vector<16x768xbf16>
    %c16 = arith.constant 16 : index
    %c0_5 = arith.constant 0 : index
    %8 = vector.load %arg10[%c16, %c0_5] : memref<144x768xbf16, #tpu.memory_space<vmem>>, vector<16x768xbf16>
    tpu.vector_store %arg10[%c16, %c0_5], %7 {strides = array<i32>} : memref<144x768xbf16, #tpu.memory_space<vmem>>, vector<16x768xbf16>,
    %c0_6 = arith.constant 0 : index
    %c111 = arith.constant 111 : index
    %9 = vector.load %arg0[%c0_6, %c111] : memref<16x1024xf32, #tpu.memory_space<vmem>>, vector<16x768xf32>
    %10 = arith.truncf %9 : vector<16x768xf32> to vector<16x768xbf16>
    %c32 = arith.constant 32 : index
    %c0_7 = arith.constant 0 : index
    %11 = vector.load %arg10[%c32, %c0_7] : memref<144x768xbf16, #tpu.memory_space<vmem>>, vector<16x768xbf16>
    tpu.vector_store %arg10[%c32, %c0_7], %10 {strides = array<i32>} : memref<144x768xbf16, #tpu.memory_space<vmem>>, vector<16x768xbf16>,
    %c0_8 = arith.constant 0 : index
    %c127 = arith.constant 127 : index
    %12 = vector.load %arg0[%c0_8, %c127] : memref<16x1024xf32, #tpu.memory_space<vmem>>, vector<16x768xf32>
    %13 = arith.truncf %12 : vector<16x768xf32> to vector<16x768xbf16>
    %c48 = arith.constant 48 : index
    %c0_9 = arith.constant 0 : index
    %14 = vector.load %arg10[%c48, %c0_9] : memref<144x768xbf16, #tpu.memory_space<vmem>>, vector<16x768xbf16>
    tpu.vector_store %arg10[%c48, %c0_9], %13 {strides = array<i32>} : memref<144x768xbf16, #tpu.memory_space<vmem>>, vector<16x768xbf16>,
    %c0_10 = arith.constant 0 : index
    %c128 = arith.constant 128 : index
    %15 = vector.load %arg0[%c0_10, %c128] : memref<16x1024xf32, #tpu.memory_space<vmem>>, vector<16x768xf32>
    %16 = arith.truncf %15 : vector<16x768xf32> to vector<16x768xbf16>
    %c64 = arith.constant 64 : index
    %c0_11 = arith.constant 0 : index
    %17 = vector.load %arg10[%c64, %c0_11] : memref<144x768xbf16, #tpu.memory_space<vmem>>, vector<16x768xbf16>
    tpu.vector_store %arg10[%c64, %c0_11], %16 {strides = array<i32>} : memref<144x768xbf16, #tpu.memory_space<vmem>>, vector<16x768xbf16>,
    %c0_12 = arith.constant 0 : index
    %c129 = arith.constant 129 : index
    %18 = vector.load %arg0[%c0_12, %c129] : memref<16x1024xf32, #tpu.memory_space<vmem>>, vector<16x768xf32>
    %19 = arith.truncf %18 : vector<16x768xf32> to vector<16x768xbf16>
    %c80 = arith.constant 80 : index
    %c0_13 = arith.constant 0 : index
    %20 = vector.load %arg10[%c80, %c0_13] : memref<144x768xbf16, #tpu.memory_space<vmem>>, vector<16x768xbf16>
    tpu.vector_store %arg10[%c80, %c0_13], %19 {strides = array<i32>} : memref<144x768xbf16, #tpu.memory_space<vmem>>, vector<16x768xbf16>,
    %c0_14 = arith.constant 0 : index
    %c145 = arith.constant 145 : index
    %21 = vector.load %arg0[%c0_14, %c145] : memref<16x1024xf32, #tpu.memory_space<vmem>>, vector<16x768xf32>
    %22 = arith.truncf %21 : vector<16x768xf32> to vector<16x768xbf16>
    %c96 = arith.constant 96 : index
    %c0_15 = arith.constant 0 : index
    %23 = vector.load %arg10[%c96, %c0_15] : memref<144x768xbf16, #tpu.memory_space<vmem>>, vector<16x768xbf16>
    tpu.vector_store %arg10[%c96, %c0_15], %22 {strides = array<i32>} : memref<144x768xbf16, #tpu.memory_space<vmem>>, vector<16x768xbf16>,
    %c0_16 = arith.constant 0 : index
    %c146 = arith.constant 146 : index
    %24 = vector.load %arg0[%c0_16, %c146] : memref<16x1024xf32, #tpu.memory_space<vmem>>, vector<16x768xf32>
    %25 = arith.truncf %24 : vector<16x768xf32> to vector<16x768xbf16>
    %c112 = arith.constant 112 : index
    %c0_17 = arith.constant 0 : index
    %26 = vector.load %arg10[%c112, %c0_17] : memref<144x768xbf16, #tpu.memory_space<vmem>>, vector<16x768xbf16>
    tpu.vector_store %arg10[%c112, %c0_17], %25 {strides = array<i32>} : memref<144x768xbf16, #tpu.memory_space<vmem>>, vector<16x768xbf16>,
    %c0_18 = arith.constant 0 : index
    %c147 = arith.constant 147 : index
    %27 = vector.load %arg0[%c0_18, %c147] : memref<16x1024xf32, #tpu.memory_space<vmem>>, vector<16x768xf32>
    %28 = arith.truncf %27 : vector<16x768xf32> to vector<16x768xbf16>
    %c128_19 = arith.constant 128 : index
    %c0_20 = arith.constant 0 : index
    %29 = vector.load %arg10[%c128_19, %c0_20] : memref<144x768xbf16, #tpu.memory_space<vmem>>, vector<16x768xbf16>
    tpu.vector_store %arg10[%c128_19, %c0_20], %28 {strides = array<i32>} : memref<144x768xbf16, #tpu.memory_space<vmem>>, vector<16x768xbf16>,
    %c0_21 = arith.constant 0 : index
    %c0_22 = arith.constant 0 : index
    %30 = vector.load %arg1[%c0_21, %c0_22] : memref<16x144xbf16, #tpu.memory_space<vmem>>, vector<16x144xbf16>
    %c0_23 = arith.constant 0 : index
    %c0_24 = arith.constant 0 : index
    %31 = vector.load %arg10[%c0_23, %c0_24] : memref<144x768xbf16, #tpu.memory_space<vmem>>, vector<144x768xbf16>
    %cst_25 = arith.constant dense<0.000000e+00> : vector<16x768xf32>
    %32 = tpu.matmul %30, %31, %cst_25 {dimension_numbers = #tpu.dot_dimension_numbers<[1], [0], [0], [1], [0, 0, 1, 1], [], []>} : vector<16x144xbf16>, vector<144x768xbf16>, vector<16x768xf32> -> vector<16x768xf32>
    %cst_26 = arith.constant 0.000000e+00 : f32
    %33 = vector.shape_cast %2 : vector<1x768xi1> to vector<1x768xi1>
    %34 = vector.broadcast %33 : vector<1x768xi1> to vector<16x768xi1>
    %35 = vector.broadcast %cst_26 : f32 to vector<16x768xf32>
    %36 = arith.select %34, %32, %35 : vector<16x768xi1>, vector<16x768xf32>
    %cst_27 = arith.constant dense<0.000000e+00> : vector<16xf32>
    %37 = vector.multi_reduction <add>, %36, %cst_27 [1] : vector<16x768xf32> to vector<16xf32>
    %38 = vector.shape_cast %37 : vector<16xf32> to vector<16x1xf32>
    %cst_28 = arith.constant 0.001953125 : f32
    %39 = vector.broadcast %cst_28 : f32 to vector<16x1xf32>
    %40 = arith.mulf %38, %39 : vector<16x1xf32>
    %41 = vector.broadcast %40 : vector<16x1xf32> to vector<16x768xf32>
    %42 = arith.subf %32, %41 : vector<16x768xf32>
    %cst_29 = arith.constant 0.000000e+00 : f32
    %43 = vector.shape_cast %2 : vector<1x768xi1> to vector<1x768xi1>
    %44 = vector.broadcast %43 : vector<1x768xi1> to vector<16x768xi1>
    %45 = vector.broadcast %cst_29 : f32 to vector<16x768xf32>
    %46 = arith.select %44, %42, %45 : vector<16x768xi1>, vector<16x768xf32>
    %47 = arith.mulf %46, %46 : vector<16x768xf32>
    %cst_30 = arith.constant dense<0.000000e+00> : vector<16xf32>
    %48 = vector.multi_reduction <add>, %47, %cst_30 [1] : vector<16x768xf32> to vector<16xf32>
    %49 = vector.shape_cast %48 : vector<16xf32> to vector<16x1xf32>
    %cst_31 = arith.constant 0.001953125 : f32
    %50 = vector.broadcast %cst_31 : f32 to vector<16x1xf32>
    %51 = arith.mulf %49, %50 : vector<16x1xf32>
    %cst_32 = arith.constant 9.99999974E-6 : f32
    %52 = vector.broadcast %cst_32 : f32 to vector<16x1xf32>
    %53 = arith.addf %51, %52 : vector<16x1xf32>
    %54 = math.rsqrt %53 : vector<16x1xf32>
    %55 = vector.broadcast %54 : vector<16x1xf32> to vector<16x768xf32>
    %56 = arith.mulf %42, %55 : vector<16x768xf32>
    %c0_33 = arith.constant 0 : index
    %c0_34 = arith.constant 0 : index
    %57 = vector.load %arg2[%c0_33, %c0_34] : memref<16x1xf32, #tpu.memory_space<vmem>>, vector<16x1xf32>
    %58 = vector.broadcast %57 : vector<16x1xf32> to vector<16x768xf32>
    %59 = arith.mulf %56, %58 : vector<16x768xf32>
    %c0_35 = arith.constant 0 : index
    %c0_36 = arith.constant 0 : index
    %60 = vector.load %arg3[%c0_35, %c0_36] : memref<16x1xf32, #tpu.memory_space<vmem>>, vector<16x1xf32>
    %61 = vector.broadcast %60 : vector<16x1xf32> to vector<16x768xf32>
    %62 = arith.addf %59, %61 : vector<16x768xf32>
    %cst_37 = arith.constant 0.000000e+00 : f32
    %63 = vector.broadcast %cst_37 : f32 to vector<16x768xf32>
    %64 = arith.cmpf ogt, %62, %63 : vector<16x768xf32>
    %cst_38 = arith.constant 2.000000e-01 : f32
    %65 = vector.broadcast %cst_38 : f32 to vector<16x768xf32>
    %66 = arith.mulf %65, %62 : vector<16x768xf32>
    %67 = arith.select %64, %62, %66 : vector<16x768xi1>, vector<16x768xf32>
    %cst_39 = arith.constant 0.000000e+00 : bf16
    %68 = vector.broadcast %cst_39 : bf16 to vector<16x128xbf16>
    %c0_40 = arith.constant 0 : index
    %c0_41 = arith.constant 0 : index
    %69 = vector.load %arg9[%c0_40, %c0_41] : memref<16x1024xbf16, #tpu.memory_space<vmem>>, vector<16x128xbf16>
    tpu.vector_store %arg9[%c0_40, %c0_41], %68 {strides = array<i32>} : memref<16x1024xbf16, #tpu.memory_space<vmem>>, vector<16x128xbf16>,
    %cst_42 = arith.constant 0.000000e+00 : bf16
    %70 = vector.broadcast %cst_42 : bf16 to vector<16x128xbf16>
    %c0_43 = arith.constant 0 : index
    %c896 = arith.constant 896 : index
    %71 = vector.load %arg9[%c0_43, %c896] : memref<16x1024xbf16, #tpu.memory_space<vmem>>, vector<16x128xbf16>
    tpu.vector_store %arg9[%c0_43, %c896], %70 {strides = array<i32>} : memref<16x1024xbf16, #tpu.memory_space<vmem>>, vector<16x128xbf16>,
    %cst_44 = arith.constant 0.000000e+00 : f32
    %72 = vector.shape_cast %2 : vector<1x768xi1> to vector<1x768xi1>
    %73 = vector.broadcast %72 : vector<1x768xi1> to vector<16x768xi1>
    %74 = vector.broadcast %cst_44 : f32 to vector<16x768xf32>
    %75 = arith.select %73, %67, %74 : vector<16x768xi1>, vector<16x768xf32>
    %76 = arith.truncf %75 : vector<16x768xf32> to vector<16x768xbf16>
    %c0_45 = arith.constant 0 : index
    %c128_46 = arith.constant 128 : index
    %77 = vector.load %arg9[%c0_45, %c128_46] : memref<16x1024xbf16, #tpu.memory_space<vmem>>, vector<16x768xbf16>
    tpu.vector_store %arg9[%c0_45, %c128_46], %76 {strides = array<i32>} : memref<16x1024xbf16, #tpu.memory_space<vmem>>, vector<16x768xbf16>,
    %c0_47 = arith.constant 0 : index
    %c109_48 = arith.constant 109 : index
    %78 = vector.load %arg9[%c0_47, %c109_48] : memref<16x1024xbf16, #tpu.memory_space<vmem>>, vector<16x768xbf16>
    %c0_49 = arith.constant 0 : index
    %c0_50 = arith.constant 0 : index
    %79 = vector.load %arg10[%c0_49, %c0_50] : memref<144x768xbf16, #tpu.memory_space<vmem>>, vector<16x768xbf16>
    tpu.vector_store %arg10[%c0_49, %c0_50], %78 {strides = array<i32>} : memref<144x768xbf16, #tpu.memory_space<vmem>>, vector<16x768xbf16>,
    %c0_51 = arith.constant 0 : index
    %c110_52 = arith.constant 110 : index
    %80 = vector.load %arg9[%c0_51, %c110_52] : memref<16x1024xbf16, #tpu.memory_space<vmem>>, vector<16x768xbf16>
    %c16_53 = arith.constant 16 : index
    %c0_54 = arith.constant 0 : index
    %81 = vector.load %arg10[%c16_53, %c0_54] : memref<144x768xbf16, #tpu.memory_space<vmem>>, vector<16x768xbf16>
    tpu.vector_store %arg10[%c16_53, %c0_54], %80 {strides = array<i32>} : memref<144x768xbf16, #tpu.memory_space<vmem>>, vector<16x768xbf16>,
    %c0_55 = arith.constant 0 : index
    %c111_56 = arith.constant 111 : index
    %82 = vector.load %arg9[%c0_55, %c111_56] : memref<16x1024xbf16, #tpu.memory_space<vmem>>, vector<16x768xbf16>
    %c32_57 = arith.constant 32 : index
    %c0_58 = arith.constant 0 : index
    %83 = vector.load %arg10[%c32_57, %c0_58] : memref<144x768xbf16, #tpu.memory_space<vmem>>, vector<16x768xbf16>
    tpu.vector_store %arg10[%c32_57, %c0_58], %82 {strides = array<i32>} : memref<144x768xbf16, #tpu.memory_space<vmem>>, vector<16x768xbf16>,
    %c0_59 = arith.constant 0 : index
    %c127_60 = arith.constant 127 : index
    %84 = vector.load %arg9[%c0_59, %c127_60] : memref<16x1024xbf16, #tpu.memory_space<vmem>>, vector<16x768xbf16>
    %c48_61 = arith.constant 48 : index
    %c0_62 = arith.constant 0 : index
    %85 = vector.load %arg10[%c48_61, %c0_62] : memref<144x768xbf16, #tpu.memory_space<vmem>>, vector<16x768xbf16>
    tpu.vector_store %arg10[%c48_61, %c0_62], %84 {strides = array<i32>} : memref<144x768xbf16, #tpu.memory_space<vmem>>, vector<16x768xbf16>,
    %c0_63 = arith.constant 0 : index
    %c128_64 = arith.constant 128 : index
    %86 = vector.load %arg9[%c0_63, %c128_64] : memref<16x1024xbf16, #tpu.memory_space<vmem>>, vector<16x768xbf16>
    %c64_65 = arith.constant 64 : index
    %c0_66 = arith.constant 0 : index
    %87 = vector.load %arg10[%c64_65, %c0_66] : memref<144x768xbf16, #tpu.memory_space<vmem>>, vector<16x768xbf16>
    tpu.vector_store %arg10[%c64_65, %c0_66], %86 {strides = array<i32>} : memref<144x768xbf16, #tpu.memory_space<vmem>>, vector<16x768xbf16>,
    %c0_67 = arith.constant 0 : index
    %c129_68 = arith.constant 129 : index
    %88 = vector.load %arg9[%c0_67, %c129_68] : memref<16x1024xbf16, #tpu.memory_space<vmem>>, vector<16x768xbf16>
    %c80_69 = arith.constant 80 : index
    %c0_70 = arith.constant 0 : index
    %89 = vector.load %arg10[%c80_69, %c0_70] : memref<144x768xbf16, #tpu.memory_space<vmem>>, vector<16x768xbf16>
    tpu.vector_store %arg10[%c80_69, %c0_70], %88 {strides = array<i32>} : memref<144x768xbf16, #tpu.memory_space<vmem>>, vector<16x768xbf16>,
    %c0_71 = arith.constant 0 : index
    %c145_72 = arith.constant 145 : index
    %90 = vector.load %arg9[%c0_71, %c145_72] : memref<16x1024xbf16, #tpu.memory_space<vmem>>, vector<16x768xbf16>
    %c96_73 = arith.constant 96 : index
    %c0_74 = arith.constant 0 : index
    %91 = vector.load %arg10[%c96_73, %c0_74] : memref<144x768xbf16, #tpu.memory_space<vmem>>, vector<16x768xbf16>
    tpu.vector_store %arg10[%c96_73, %c0_74], %90 {strides = array<i32>} : memref<144x768xbf16, #tpu.memory_space<vmem>>, vector<16x768xbf16>,
    %c0_75 = arith.constant 0 : index
    %c146_76 = arith.constant 146 : index
    %92 = vector.load %arg9[%c0_75, %c146_76] : memref<16x1024xbf16, #tpu.memory_space<vmem>>, vector<16x768xbf16>
    %c112_77 = arith.constant 112 : index
    %c0_78 = arith.constant 0 : index
    %93 = vector.load %arg10[%c112_77, %c0_78] : memref<144x768xbf16, #tpu.memory_space<vmem>>, vector<16x768xbf16>
    tpu.vector_store %arg10[%c112_77, %c0_78], %92 {strides = array<i32>} : memref<144x768xbf16, #tpu.memory_space<vmem>>, vector<16x768xbf16>,
    %c0_79 = arith.constant 0 : index
    %c147_80 = arith.constant 147 : index
    %94 = vector.load %arg9[%c0_79, %c147_80] : memref<16x1024xbf16, #tpu.memory_space<vmem>>, vector<16x768xbf16>
    %c128_81 = arith.constant 128 : index
    %c0_82 = arith.constant 0 : index
    %95 = vector.load %arg10[%c128_81, %c0_82] : memref<144x768xbf16, #tpu.memory_space<vmem>>, vector<16x768xbf16>
    tpu.vector_store %arg10[%c128_81, %c0_82], %94 {strides = array<i32>} : memref<144x768xbf16, #tpu.memory_space<vmem>>, vector<16x768xbf16>,
    %c0_83 = arith.constant 0 : index
    %c0_84 = arith.constant 0 : index
    %96 = vector.load %arg4[%c0_83, %c0_84] : memref<16x144xbf16, #tpu.memory_space<vmem>>, vector<16x144xbf16>
    %c0_85 = arith.constant 0 : index
    %c0_86 = arith.constant 0 : index
    %97 = vector.load %arg10[%c0_85, %c0_86] : memref<144x768xbf16, #tpu.memory_space<vmem>>, vector<144x768xbf16>
    %cst_87 = arith.constant dense<0.000000e+00> : vector<16x768xf32>
    %98 = tpu.matmul %96, %97, %cst_87 {dimension_numbers = #tpu.dot_dimension_numbers<[1], [0], [0], [1], [0, 0, 1, 1], [], []>} : vector<16x144xbf16>, vector<144x768xbf16>, vector<16x768xf32> -> vector<16x768xf32>
    %cst_88 = arith.constant 0.000000e+00 : f32
    %99 = vector.shape_cast %2 : vector<1x768xi1> to vector<1x768xi1>
    %100 = vector.broadcast %99 : vector<1x768xi1> to vector<16x768xi1>
    %101 = vector.broadcast %cst_88 : f32 to vector<16x768xf32>
    %102 = arith.select %100, %98, %101 : vector<16x768xi1>, vector<16x768xf32>
    %cst_89 = arith.constant dense<0.000000e+00> : vector<16xf32>
    %103 = vector.multi_reduction <add>, %102, %cst_89 [1] : vector<16x768xf32> to vector<16xf32>
    %104 = vector.shape_cast %103 : vector<16xf32> to vector<16x1xf32>
    %cst_90 = arith.constant 0.001953125 : f32
    %105 = vector.broadcast %cst_90 : f32 to vector<16x1xf32>
    %106 = arith.mulf %104, %105 : vector<16x1xf32>
    %107 = vector.broadcast %106 : vector<16x1xf32> to vector<16x768xf32>
    %108 = arith.subf %98, %107 : vector<16x768xf32>
    %cst_91 = arith.constant 0.000000e+00 : f32
    %109 = vector.shape_cast %2 : vector<1x768xi1> to vector<1x768xi1>
    %110 = vector.broadcast %109 : vector<1x768xi1> to vector<16x768xi1>
    %111 = vector.broadcast %cst_91 : f32 to vector<16x768xf32>
    %112 = arith.select %110, %108, %111 : vector<16x768xi1>, vector<16x768xf32>
    %113 = arith.mulf %112, %112 : vector<16x768xf32>
    %cst_92 = arith.constant dense<0.000000e+00> : vector<16xf32>
    %114 = vector.multi_reduction <add>, %113, %cst_92 [1] : vector<16x768xf32> to vector<16xf32>
    %115 = vector.shape_cast %114 : vector<16xf32> to vector<16x1xf32>
    %cst_93 = arith.constant 0.001953125 : f32
    %116 = vector.broadcast %cst_93 : f32 to vector<16x1xf32>
    %117 = arith.mulf %115, %116 : vector<16x1xf32>
    %cst_94 = arith.constant 9.99999974E-6 : f32
    %118 = vector.broadcast %cst_94 : f32 to vector<16x1xf32>
    %119 = arith.addf %117, %118 : vector<16x1xf32>
    %120 = math.rsqrt %119 : vector<16x1xf32>
    %121 = vector.broadcast %120 : vector<16x1xf32> to vector<16x768xf32>
    %122 = arith.mulf %108, %121 : vector<16x768xf32>
    %c0_95 = arith.constant 0 : index
    %c0_96 = arith.constant 0 : index
    %123 = vector.load %arg5[%c0_95, %c0_96] : memref<16x1xf32, #tpu.memory_space<vmem>>, vector<16x1xf32>
    %124 = vector.broadcast %123 : vector<16x1xf32> to vector<16x768xf32>
    %125 = arith.mulf %122, %124 : vector<16x768xf32>
    %c0_97 = arith.constant 0 : index
    %c0_98 = arith.constant 0 : index
    %126 = vector.load %arg6[%c0_97, %c0_98] : memref<16x1xf32, #tpu.memory_space<vmem>>, vector<16x1xf32>
    %127 = vector.broadcast %126 : vector<16x1xf32> to vector<16x768xf32>
    %128 = arith.addf %125, %127 : vector<16x768xf32>
    %c0_99 = arith.constant 0 : index
    %c128_100 = arith.constant 128 : index
    %129 = vector.load %arg0[%c0_99, %c128_100] : memref<16x1024xf32, #tpu.memory_space<vmem>>, vector<16x768xf32>
    %130 = arith.addf %128, %129 : vector<16x768xf32>
    %c0_101 = arith.constant 0 : index
    %c0_102 = arith.constant 0 : index
    %131 = vector.load %arg8[%c0_101, %c0_102] : memref<16x768xf32, #tpu.memory_space<vmem>>, vector<16x768xf32>
    tpu.vector_store %arg8[%c0_101, %c0_102], %130 {strides = array<i32>} : memref<16x768xf32, #tpu.memory_space<vmem>>, vector<16x768xf32>,
    return
  }
}

</mosaic_0001>

<bundles_post_ra>
// kernel: tpu_custom_call.1
= control target key start
LH: loop header
LB: loop body
LE: loop exit
PB: predicated region body
PF: predicated region fallthrough
CT: control target
= control target key end

     0   :  { %13 = vsyncpa [#allocation5], 0  ;;  %s2642_s0 = inlined_call_operand.hbm [shape: f32[16,1024], index: 0, kind: input, shape index: {}]   ;;  %s2643_s1 = inlined_call_operand.vmem [shape: bf16[16,144], index: 1, kind: input, shape index: {}]   ;;  %s2644_s2 = inlined_call_operand.vmem [shape: f32[16,1], index: 2, kind: input, shape index: {}]   ;;  %s2645_s3 = inlined_call_operand.vmem [shape: f32[16,1], index: 3, kind: input, shape index: {}]   ;;  %s2646_s4 = inlined_call_operand.vmem [shape: bf16[16,144], index: 4, kind: input, shape index: {}]   ;;  %s2647_s5 = inlined_call_operand.vmem [shape: f32[16,1], index: 5, kind: input, shape index: {}]   ;;  %s2648_s6 = inlined_call_operand.vmem [shape: f32[16,1], index: 6, kind: input, shape index: {}]   ;;  %s2649_s7 = inlined_call_operand.vmem [shape: f32[1,768], index: 7, kind: input, shape index: {}]   ;;  %s2650_s8 = inlined_call_operand.hbm [shape: f32[16,768], index: 8, kind: output, shape index: {}]  }
   0x1   :  { %14 = vsyncpa [#allocation6], 0  ;;  %s1875_s27 = smov [#allocation4]   ;;  %s1827_s9 = scalar_lea.hbm %s2642_s0, 2048 }
   0x2   :  { %s20_s28 = sshll.u32 %s1875_s27, 4  ;;  %p1828_p0 = scmp.ne.s32.totalorder %s2642_s0, %s1827_s9  ;;  %s21_s28 = int_to_ptr.vmem [resolvable:$true] %s20_s28 }
   0x3   :  { %p1831_p1 = scmp.lt.u32.totalorder %s1827_s9, %s2642_s0 }
   0x5   :  { %p1833_p2 = pnand %p1831_p1, %p1828_p0 }
   0x7   :  { %1836 = shalt.err (!%p1833_p2)
}
   0x8   :  { %s1837_s14 = scalar_lea.vmem %s21_s28, 2048  ;;  %p1842_p4 = scmp.lt.s32.totalorder %s21_s28, %s21_s28 }
   0x9   :  { %p1838_p3 = scmp.ne.s32.totalorder %s21_s28, %s1837_s14  ;;  %p1843_p5 = scmp.lt.s32.totalorder %s1837_s14, %s1837_s14 }
   0xb   :  { %p1844_p6 = por %p1843_p5, %p1842_p4 }
   0xd   :  { %p1845_p7 = pnand %p1844_p6, %p1838_p3 }
   0xf   :  { %1848 = shalt.err (!%p1845_p7)
}
  0x10   :  { %s1876_s15 = smov 1024   ;;  %s1877_s16 = smov 64  }
  0x11   :  { %26 = dma.hbm_to_vmem [thread:$0]  %s2642_s0, 2048, %s21_s28, [#allocation5], %s1876_s15, %s1876_s15, %s1877_s16  }
  0x12   :  { %1871 = dma.done.wait [#allocation5], 2048  }
  0x13   :  { %1872 = vsyncadd [#allocation5], 4294965248  ;;  %v48_v0 = vld [vmem:[#allocation4 + $0x8] sm:$0xff]  ;;  %v47_v2 = vld [vmem:[#allocation4] sm:$0xff]  ;;  %s1878_s19 = smov 19   ;;  %s1879_s0 = smov 18  }
  0x14   :  { %v55_v1 = vld [vmem:[#allocation4 + $0x48] sm:$0xff]  ;;  %v54_v4 = vld [vmem:[#allocation4 + $0x40] sm:$0xff]  ;;  %v49_v5 = vld [vmem:[#allocation4 + $0x10] sm:$0xff]  ;;  %s1880_s20 = smov 17   ;;  %s1881_s21 = smov 1   ;;  %vm2660_vm0 = vcmask 130048  }
  0x15   :  { %v1947_v3 = vpack.c.bf16 %v55_v1, %v48_v0  ;;  %v56_v6 = vld [vmem:[#allocation4 + $0x50] sm:$0xff]  ;;  %v61_v7 = vpack.c.bf16 %v54_v4, %v47_v2  ;;  %v317_v9 = vld [vmem:[#allocation4 + $0x18] sm:$0xff]  ;;  %s1882_s22 = smov 127   ;;  %s1883_s23 = smov 111   ;;  %v51_v12 = vld [vmem:[#allocation4 + $0x20] sm:$0xff]  ;;  %vm2658_vm1 = vcmask 154624  }
  0x16   :  { %v1951_v8 = vpack.c.bf16 %v56_v6, %v49_v5  ;;  %v324_v10 = vld [vmem:[#allocation4 + $0x58] sm:$0xff]  ;;  %s1884_s24 = smov 110   ;;  %v58_v13 = vld [vmem:[#allocation4 + $0x60] sm:$0xff]  ;;  %s1885_s27 = smov 109   ;;  %v52_v16 = vld [vmem:[#allocation4 + $0x28] sm:$0xff]  ;;  %vm2657_vm2 = vcmask 146432  }
  0x17   :  { %77 = vrot.lane.b32.xlu0 %v1947_v3, %s1878_s19  ;;  %75 = vrot.lane.b32.xlu1 %v61_v7, %s1878_s19  ;;  %v1971_v11 = vpack.c.bf16 %v324_v10, %v317_v9  ;;  %v1992_v14 = vld [vmem:[%s2643_s1 + $0x4] ss:$8 sps:$4 sm:$0xff]   ;;  %v1996_v15 = vpack.c.bf16 %v58_v13, %v51_v12  ;;  %v53_v18 = vld [vmem:[#allocation4 + $0x30] sm:$0xff]  ;;  %v321_v22 = vld [vmem:[#allocation4 + $0x38] sm:$0xff]  ;;  %vm2656_vm3 = vcmask 138240   ;;  %vm2655_vm4 = vcmask 7168  }
  0x18   :  { %1770 = vmatprep.mubr.msk.bf16.mxu0 %vm2660_vm0, %v1992_v14  ;;  %1771 = vmatprep.mubr.msk.bf16.mxu1 %vm2660_vm0, %v1992_v14  ;;  %v59_v17 = vld [vmem:[#allocation4 + $0x68] sm:$0xff]  ;;  %v60_v19 = vld [vmem:[#allocation4 + $0x70] sm:$0xff]  ;;  %v328_v23 = vld [vmem:[#allocation4 + $0x78] sm:$0xff]  ;;  %vm2654_vm5 = vcmask 1039360   ;;  %vm2653_vm6 = vcmask 908288   ;;  %vm2652_vm7 = vcmask 900096  }
  0x19   :  { %v2010_v20 = vpack.c.bf16 %v59_v17, %v52_v16  ;;  %v2014_v21 = vpack.c.bf16 %v60_v19, %v53_v18  ;;  %v335_v24 = vpack.c.bf16 %v328_v23, %v321_v22  ;;  %vm2651_vm8 = vcmask 891904   ;;  %v2116_v5 = vld [vmem:[%s2643_s1] ss:$8 sps:$4 sm:$0xff]  }
  0x1b   :  { %79 = vrot.lane.b32.xlu0 %v1951_v8, %s1878_s19  ;;  %138 = vrot.lane.b32.xlu1 %v1947_v3, %s1879_s0 }
  0x1f   :  { %140 = vrot.lane.b32.xlu0 %v1951_v8, %s1879_s0  ;;  %136 = vrot.lane.b32.xlu1 %v61_v7, %s1879_s0 }
  0x23   :  { %199 = vrot.lane.b32.xlu0 %v1947_v3, %s1880_s20  ;;  %201 = vrot.lane.b32.xlu1 %v1951_v8, %s1880_s20 }
  0x27   :  { %197 = vrot.lane.b32.xlu0 %v61_v7, %s1880_s20  ;;  %260 = vrot.lane.b32.xlu1 %v1947_v3, %s1881_s21 }
  0x2b   :  { %262 = vrot.lane.b32.xlu0 %v1951_v8, %s1881_s21  ;;  %258 = vrot.lane.b32.xlu1 %v61_v7, %s1881_s21 }
  0x2f   :  { %345 = vrot.lane.b32.xlu0 %v1951_v8, %s1882_s22  ;;  %347 = vrot.lane.b32.xlu1 %v1971_v11, %s1882_s22 }
  0x33   :  { %343 = vrot.lane.b32.xlu0 %v1947_v3, %s1882_s22  ;;  %406 = vrot.lane.b32.xlu1 %v1951_v8, %s1883_s23 }
  0x37   :  { %408 = vrot.lane.b32.xlu0 %v1971_v11, %s1883_s23  ;;  %404 = vrot.lane.b32.xlu1 %v1947_v3, %s1883_s23 }
  0x3b   :  { %467 = vrot.lane.b32.xlu0 %v1951_v8, %s1884_s24  ;;  %469 = vrot.lane.b32.xlu1 %v1971_v11, %s1884_s24 }
  0x3f   :  { %465 = vrot.lane.b32.xlu0 %v1947_v3, %s1884_s24  ;;  %81 = vrot.lane.b32.xlu1 %v1971_v11, %s1878_s19 }
  0x43   :  { %83 = vrot.lane.b32.xlu0 %v1996_v15, %s1878_s19  ;;  %528 = vrot.lane.b32.xlu1 %v1951_v8, %s1885_s27 }
  0x47   :  { %530 = vrot.lane.b32.xlu0 %v1971_v11, %s1885_s27  ;;  %526 = vrot.lane.b32.xlu1 %v1947_v3, %s1885_s27 }
  0x4b   :  { %85 = vrot.lane.b32.xlu0 %v2010_v20, %s1878_s19  ;;  %87 = vrot.lane.b32.xlu1 %v2014_v21, %s1878_s19 }
  0x4f   :  { %142 = vrot.lane.b32.xlu0 %v1971_v11, %s1879_s0  ;;  %144 = vrot.lane.b32.xlu1 %v1996_v15, %s1879_s0 }
  0x53   :  { %146 = vrot.lane.b32.xlu0 %v2010_v20, %s1879_s0  ;;  %148 = vrot.lane.b32.xlu1 %v2014_v21, %s1879_s0 }
  0x57   :  { %203 = vrot.lane.b32.xlu0 %v1971_v11, %s1880_s20  ;;  %205 = vrot.lane.b32.xlu1 %v1996_v15, %s1880_s20 }
  0x5b   :  { %207 = vrot.lane.b32.xlu0 %v2010_v20, %s1880_s20  ;;  %209 = vrot.lane.b32.xlu1 %v2014_v21, %s1880_s20 }
  0x5f   :  { %264 = vrot.lane.b32.xlu0 %v1971_v11, %s1881_s21  ;;  %266 = vrot.lane.b32.xlu1 %v1996_v15, %s1881_s21 }
  0x63   :  { %268 = vrot.lane.b32.xlu0 %v2010_v20, %s1881_s21  ;;  %270 = vrot.lane.b32.xlu1 %v2014_v21, %s1881_s21 }
  0x67   :  { %349 = vrot.lane.b32.xlu0 %v1996_v15, %s1882_s22  ;;  %351 = vrot.lane.b32.xlu1 %v2010_v20, %s1882_s22 }
  0x6b   :  { %353 = vrot.lane.b32.xlu0 %v2014_v21, %s1882_s22  ;;  %355 = vrot.lane.b32.xlu1 %v335_v24, %s1882_s22 }
  0x6f   :  { %410 = vrot.lane.b32.xlu0 %v1996_v15, %s1883_s23  ;;  %412 = vrot.lane.b32.xlu1 %v2010_v20, %s1883_s23 }
  0x73   :  { %414 = vrot.lane.b32.xlu0 %v2014_v21, %s1883_s23  ;;  %416 = vrot.lane.b32.xlu1 %v335_v24, %s1883_s23 }
  0x77   :  { %471 = vrot.lane.b32.xlu0 %v1996_v15, %s1884_s24  ;;  %473 = vrot.lane.b32.xlu1 %v2010_v20, %s1884_s24 }
  0x7b   :  { %475 = vrot.lane.b32.xlu0 %v2014_v21, %s1884_s24  ;;  %477 = vrot.lane.b32.xlu1 %v335_v24, %s1884_s24 }
  0x7f   :  { %532 = vrot.lane.b32.xlu0 %v1996_v15, %s1885_s27  ;;  %534 = vrot.lane.b32.xlu1 %v2010_v20, %s1885_s27 }
  0x83   :  { %536 = vrot.lane.b32.xlu0 %v2014_v21, %s1885_s27  ;;  %538 = vrot.lane.b32.xlu1 %v335_v24, %s1885_s27 }
  0x89   :  { %v78_v25 = vpop.permute.xlu0 %77  ;;  %v76_v26 = vpop.permute.xlu1 %75 }
  0x8a   :  { %v90_v30 = vsel %vm2658_vm1, %v76_v26, %v78_v25 }
  0x8d   :  { %v80_v27 = vpop.permute.xlu0 %79  ;;  %v139_v28 = vpop.permute.xlu1 %138 }
  0x8e   :  { %v91_v29 = vsel %vm2658_vm1, %v78_v25, %v80_v27 }
  0x8f   :  { %628 = vmatprep.subr.bf16.mxu0 %v91_v29 }
  0x90   :  { %629 = vmatpush1.bf16.msra.mxu0 %v90_v30 }
  0x91   :  { %v2074_v31 = vpop.permute.xlu0 %140  ;;  %v137_v32 = vpop.permute.xlu1 %136 }
  0x92   :  { %v152_v33 = vsel %vm2657_vm2, %v139_v28, %v2074_v31  ;;  %v151_v34 = vsel %vm2657_vm2, %v137_v32, %v139_v28 }
  0x93   :  { %630 = vmatprep.subr.bf16.mxu0 %v152_v33 }
  0x94   :  { %631 = vmatpush1.bf16.msra.mxu0 %v151_v34 }
  0x95   :  { %v200_v35 = vpop.permute.xlu0 %199  ;;  %v2079_v36 = vpop.permute.xlu1 %201 }
  0x96   :  { %v213_v37 = vsel %vm2656_vm3, %v200_v35, %v2079_v36 }
  0x97   :  { %632 = vmatprep.subr.bf16.mxu0 %v213_v37 }
  0x99   :  { %v198_v38 = vpop.permute.xlu0 %197  ;;  %v261_v39 = vpop.permute.xlu1 %260 }
  0x9a   :  { %v212_v40 = vsel %vm2656_vm3, %v198_v38, %v200_v35 }
  0x9b   :  { %633 = vmatpush1.bf16.msra.mxu0 %v212_v40 }
  0x9d   :  { %v2084_v41 = vpop.permute.xlu0 %262  ;;  %v259_v42 = vpop.permute.xlu1 %258 }
  0x9e   :  { %v274_v43 = vsel %vm2655_vm4, %v261_v39, %v2084_v41  ;;  %v273_v44 = vsel %vm2655_vm4, %v259_v42, %v261_v39 }
  0x9f   :  { %634 = vmatprep.subr.bf16.mxu0 %v274_v43 }
  0xa0   :  { %635 = vmatpush1.bf16.msra.mxu0 %v273_v44 }
  0xa1   :  { %v346_v45 = vpop.permute.xlu0 %345  ;;  %636 = vmatprep.subr.bf16.mxu0 %v1951_v8  ;;  %v2090_v46 = vpop.permute.xlu1 %347 }
  0xa2   :  { %v359_v47 = vsel %vm2654_vm5, %v346_v45, %v2090_v46 }
  0xa4   :  { %637 = vmatpush1.bf16.msra.mxu0 %v1947_v3 }
  0xa5   :  { %v344_v48 = vpop.permute.xlu0 %343  ;;  %638 = vmatprep.subr.bf16.mxu0 %v359_v47  ;;  %v407_v49 = vpop.permute.xlu1 %406 }
  0xa6   :  { %v358_v50 = vsel %vm2654_vm5, %v344_v48, %v346_v45 }
  0xa8   :  { %639 = vmatpush1.bf16.msra.mxu0 %v358_v50 }
  0xa9   :  { %v2096_v51 = vpop.permute.xlu0 %408  ;;  %v405_v52 = vpop.permute.xlu1 %404 }
  0xaa   :  { %v420_v53 = vsel %vm2653_vm6, %v407_v49, %v2096_v51  ;;  %v419_v54 = vsel %vm2653_vm6, %v405_v52, %v407_v49 }
  0xab   :  { %640 = vmatprep.subr.bf16.mxu0 %v420_v53 }
  0xac   :  { %641 = vmatpush1.bf16.msra.mxu0 %v419_v54 }
  0xad   :  { %v468_v55 = vpop.permute.xlu0 %467  ;;  %v2101_v56 = vpop.permute.xlu1 %469 }
  0xae   :  { %v481_v57 = vsel %vm2652_vm7, %v468_v55, %v2101_v56 }
  0xaf   :  { %642 = vmatprep.subr.bf16.mxu0 %v481_v57 }
  0xb1   :  { %v466_v58 = vpop.permute.xlu0 %465  ;;  %v82_v59 = vpop.permute.xlu1 %81 }
  0xb2   :  { %v480_v60 = vsel %vm2652_vm7, %v466_v58, %v468_v55  ;;  %v92_v0 = vsel %vm2658_vm1, %v80_v27, %v82_v59 }
  0xb3   :  { %643 = vmatpush1.bf16.msra.mxu0 %v480_v60 }
  0xb5   :  { %v84_v61 = vpop.permute.xlu0 %83  ;;  %v529_v62 = vpop.permute.xlu1 %528 }
  0xb6   :  { %v93_v63 = vsel %vm2658_vm1, %v82_v59, %v84_v61 }
  0xb7   :  { %671 = vmatprep.subr.bf16.mxu1 %v93_v63 }
  0xb8   :  { %672 = vmatpush1.bf16.msra.mxu1 %v92_v0 }
  0xb9   :  { %v2108_v1 = vpop.permute.xlu0 %530  ;;  %v527_v2 = vpop.permute.xlu1 %526 }
  0xba   :  { %v542_v3 = vsel %vm2651_vm8, %v529_v62, %v2108_v1  ;;  %v541_v4 = vsel %vm2651_vm8, %v527_v2, %v529_v62 }
  0xbb   :  { %644 = vmatprep.subr.bf16.mxu0 %v542_v3  ;;  %v1886_v3 = vmov 0  }
  0xbc   :  { %645 = vmatpush1.bf16.msra.mxu0 %v541_v4  ;;  %1811 = vset.pattern.permute.xlu1 %v1886_v3  ;;  %v45_v4 = vld [vmem:[%s2649_s7] sm:$0x3f] }
  0xbd   :  { %v86_v6 = vpop.permute.xlu0 %85  ;;  %v88_v8 = vpop.permute.xlu1 %87  ;;  %1812 = vset.pattern.permute.xlu0 %v1886_v3  ;;  %vm46_vm9 = vcmp.ne.f32.partialorder %v45_v4, 0.0 }
  0xbe   :  { %v94_v7 = vsel %vm2658_vm1, %v84_v61, %v86_v6  ;;  %v95_v9 = vsel %vm2658_vm1, %v86_v6, %v88_v8  ;;  %v757_v8 = vsel %vm46_vm9, 1, %v1886_v3 }
  0xbf   :  { %661 = vmatmul.mubr.bf16.vlgmr.msra.gmra.mrb[0].mxu0 %v2116_v5  ;;  %714 = vmatprep.subr.bf16.mxu0 %v95_v9 }
  0xc0   :  { %1772 = vmatprep.mubr.msk.bf16.mxu0 %vm2660_vm0, %v1992_v14  ;;  %715 = vmatpush1.bf16.msra.mxu0 %v94_v7 }
  0xc1   :  { %v143_v10 = vpop.permute.xlu0 %142  ;;  %v145_v12 = vpop.permute.xlu1 %144 }
  0xc2   :  { %v153_v13 = vsel %vm2657_vm2, %v2074_v31, %v143_v10  ;;  %v154_v16 = vsel %vm2657_vm2, %v143_v10, %v145_v12 }
  0xc3   :  { %673 = vmatprep.subr.bf16.mxu1 %v154_v16 }
  0xc4   :  { %674 = vmatpush1.bf16.msra.mxu1 %v153_v13 }
  0xc5   :  { %v147_v17 = vpop.permute.xlu0 %146  ;;  %v149_v19 = vpop.permute.xlu1 %148 }
  0xc6   :  { %v155_v18 = vsel %vm2657_vm2, %v145_v12, %v147_v17  ;;  %v156_v22 = vsel %vm2657_vm2, %v147_v17, %v149_v19 }
  0xc7   :  { %716 = vmatprep.subr.bf16.mxu0 %v156_v22 }
  0xc8   :  { %717 = vmatpush1.bf16.msra.mxu0 %v155_v18 }
  0xc9   :  { %v204_v23 = vpop.permute.xlu0 %203  ;;  %v206_v14 = vpop.permute.xlu1 %205 }
  0xca   :  { %v214_v24 = vsel %vm2656_vm3, %v2079_v36, %v204_v23  ;;  %v215_v25 = vsel %vm2656_vm3, %v204_v23, %v206_v14 }
  0xcb   :  { %675 = vmatprep.subr.bf16.mxu1 %v215_v25 }
  0xcc   :  { %676 = vmatpush1.bf16.msra.mxu1 %v214_v24 }
  0xcd   :  { %v208_v26 = vpop.permute.xlu0 %207  ;;  %v210_v28 = vpop.permute.xlu1 %209 }
  0xce   :  { %v216_v27 = vsel %vm2656_vm3, %v206_v14, %v208_v26  ;;  %v217_v29 = vsel %vm2656_vm3, %v208_v26, %v210_v28 }
  0xcf   :  { %718 = vmatprep.subr.bf16.mxu0 %v217_v29 }
  0xd0   :  { %719 = vmatpush1.bf16.msra.mxu0 %v216_v27 }
  0xd1   :  { %v265_v30 = vpop.permute.xlu0 %264  ;;  %v267_v31 = vpop.permute.xlu1 %266 }
  0xd2   :  { %v275_v32 = vsel %vm2655_vm4, %v2084_v41, %v265_v30  ;;  %v276_v33 = vsel %vm2655_vm4, %v265_v30, %v267_v31 }
  0xd3   :  { %677 = vmatprep.subr.bf16.mxu1 %v276_v33 }
  0xd4   :  { %678 = vmatpush1.bf16.msra.mxu1 %v275_v32 }
  0xd5   :  { %v269_v34 = vpop.permute.xlu0 %268  ;;  %v271_v36 = vpop.permute.xlu1 %270  ;;  %679 = vmatprep.subr.bf16.mxu1 %v1996_v15 }
  0xd6   :  { %v277_v35 = vsel %vm2655_vm4, %v267_v31, %v269_v34  ;;  %v278_v37 = vsel %vm2655_vm4, %v269_v34, %v271_v36 }
  0xd7   :  { %720 = vmatprep.subr.bf16.mxu0 %v278_v37 }
  0xd8   :  { %680 = vmatpush1.bf16.msra.mxu1 %v1971_v11  ;;  %721 = vmatpush1.bf16.msra.mxu0 %v277_v35 }
  0xd9   :  { %v350_v38 = vpop.permute.xlu0 %349  ;;  %v352_v39 = vpop.permute.xlu1 %351  ;;  %722 = vmatprep.subr.bf16.mxu0 %v2014_v21 }
  0xda   :  { %v360_v40 = vsel %vm2654_vm5, %v2090_v46, %v350_v38  ;;  %v361_v41 = vsel %vm2654_vm5, %v350_v38, %v352_v39 }
  0xdb   :  { %681 = vmatprep.subr.bf16.mxu1 %v361_v41 }
  0xdc   :  { %682 = vmatpush1.bf16.msra.mxu1 %v360_v40  ;;  %723 = vmatpush1.bf16.msra.mxu0 %v2010_v20 }
  0xdd   :  { %v354_v15 = vpop.permute.xlu0 %353  ;;  %v356_v43 = vpop.permute.xlu1 %355 }
  0xde   :  { %v362_v42 = vsel %vm2654_vm5, %v352_v39, %v354_v15  ;;  %v363_v11 = vsel %vm2654_vm5, %v354_v15, %v356_v43 }
  0xdf   :  { %724 = vmatprep.subr.bf16.mxu0 %v363_v11 }
  0xe0   :  { %725 = vmatpush1.bf16.msra.mxu0 %v362_v42 }
  0xe1   :  { %v411_v44 = vpop.permute.xlu0 %410  ;;  %v413_v45 = vpop.permute.xlu1 %412 }
  0xe2   :  { %v421_v21 = vsel %vm2653_vm6, %v2096_v51, %v411_v44  ;;  %v422_v46 = vsel %vm2653_vm6, %v411_v44, %v413_v45 }
  0xe3   :  { %683 = vmatprep.subr.bf16.mxu1 %v422_v46 }
  0xe4   :  { %684 = vmatpush1.bf16.msra.mxu1 %v421_v21 }
  0xe5   :  { %v415_v47 = vpop.permute.xlu0 %414  ;;  %v417_v48 = vpop.permute.xlu1 %416 }
  0xe6   :  { %v423_v20 = vsel %vm2653_vm6, %v413_v45, %v415_v47  ;;  %v424_v49 = vsel %vm2653_vm6, %v415_v47, %v417_v48 }
  0xe7   :  { %726 = vmatprep.subr.bf16.mxu0 %v424_v49 }
  0xe8   :  { %727 = vmatpush1.bf16.msra.mxu0 %v423_v20 }
  0xe9   :  { %v472_v50 = vpop.permute.xlu0 %471  ;;  %v474_v52 = vpop.permute.xlu1 %473 }
  0xea   :  { %v482_v53 = vsel %vm2652_vm7, %v2101_v56, %v472_v50  ;;  %v483_v54 = vsel %vm2652_vm7, %v472_v50, %v474_v52 }
  0xeb   :  { %685 = vmatprep.subr.bf16.mxu1 %v483_v54  ;;  %v884_v54 = vld [vmem:[%s2644_s2] sm:$0xff] }
  0xec   :  { %686 = vmatpush1.bf16.msra.mxu1 %v482_v53 }
  0xed   :  { %v476_v51 = vpop.permute.xlu0 %475  ;;  %v478_v57 = vpop.permute.xlu1 %477 }
  0xee   :  { %v484_v55 = vsel %vm2652_vm7, %v474_v52, %v476_v51  ;;  %v485_v58 = vsel %vm2652_vm7, %v476_v51, %v478_v57  ;;  %v908_v51 = vld [vmem:[%s2645_s3] sm:$0xff] }
  0xef   :  { %728 = vmatprep.subr.bf16.mxu0 %v485_v58 }
  0xf0   :  { %729 = vmatpush1.bf16.msra.mxu0 %v484_v55  ;;  %v909_v55 = vld [vmem:[%s2645_s3 + $0x8] sm:$0xff] }
  0xf1   :  { %v533_v59 = vpop.permute.xlu0 %532  ;;  %v535_v60 = vpop.permute.xlu1 %534 }
  0xf2   :  { %v543_v61 = vsel %vm2651_vm8, %v2108_v1, %v533_v59  ;;  %v544_v62 = vsel %vm2651_vm8, %v533_v59, %v535_v60  ;;  %v758_v1 = vlaneseq }
  0xf3   :  { %687 = vmatprep.subr.bf16.mxu1 %v544_v62 }
  0xf4   :  { %688 = vmatpush1.bf16.msra.mxu1 %v543_v61  ;;  %v759_v6 = vshrl.u32 %v758_v1, 7 }
  0xf5   :  { %v537_v56 = vpop.permute.xlu0 %536  ;;  %v539_v0 = vpop.permute.xlu1 %538 }
  0xf6   :  { %v545_v63 = vsel %vm2651_vm8, %v535_v60, %v537_v56  ;;  %v546_v2 = vsel %vm2651_vm8, %v537_v56, %v539_v0  ;;  %v760_v7 = vsub.s32 0, %v759_v6  ;;  %v764_v9 = vsub.s32 1, %v759_v6 }
  0xf7   :  { %704 = vmatmul.mubr.bf16.vlgmr.msra.gmra.mrb[0].mxu1 %v2116_v5  ;;  %730 = vmatprep.subr.bf16.mxu0 %v546_v2  ;;  %v768_v25 = vsub.s32 2, %v759_v6  ;;  %v772_v26 = vsub.s32 3, %v759_v6  ;;  %v776_v28 = vsub.s32 4, %v759_v6  ;;  %v780_v30 = vsub.s32 5, %v759_v6 }
  0xf8   :  { %731 = vmatpush1.bf16.msra.mxu0 %v545_v63  ;;  %v2170_v10 = vrot.slane %v757_v8, %v760_v7  ;;  %v2172_v12 = vrot.slane %v757_v8, %v764_v9 }
  0xf9   :  { %v2196_v27 = vrot.slane %v757_v8, %v768_v25  ;;  %v2198_v29 = vrot.slane %v757_v8, %v772_v26  ;;  %v2201_v31 = vrot.slane %v757_v8, %v776_v28  ;;  %v2204_v32 = vrot.slane %v757_v8, %v780_v30 }
  0xfa   :  { %vm782_vm10 = vcmp.eq.s32.totalorder %v2170_v10, 1  ;;  %vm783_vm11 = vcmp.eq.s32.totalorder %v2172_v12, 1 }
  0xfb   :  { %747 = vmatmul.mubr.bf16.vlgmr.msra.gmra.mrb[4].mxu0 %v2116_v5  ;;  %vm784_vm12 = vcmp.eq.s32.totalorder %v2196_v27, 1  ;;  %vm785_vm13 = vcmp.eq.s32.totalorder %v2198_v29, 1  ;;  %vm2661_vm14 = vcmp.eq.s32.totalorder %v2201_v31, 1  ;;  %vm2659_vm15 = vcmp.eq.s32.totalorder %v2204_v32, 1 }
 0x192   :  { %v2176_v5 = vpop.f32.mrb[0].mxu0 }
 0x193   :  { %v788_v13 = vsel %vm782_vm10, %v2176_v5, 0.0  ;;  %v2181_v16 = vpop.f32.mrb[1].mxu0 }
 0x194   :  { %v789_v17 = vsel %vm783_vm11, %v2181_v16, 0.0  ;;  %v2186_v18 = vpop.f32.mrb[2].mxu0 }
 0x195   :  { %v800_v19 = vadd.f32 %v789_v17, %v788_v13  ;;  %v794_v22 = vsel %vm782_vm10, %v2186_v18, 0.0  ;;  %v2191_v23 = vpop.f32.mrb[3].mxu0 }
 0x196   :  { %v795_v14 = vsel %vm783_vm11, %v2191_v23, 0.0 }
 0x197   :  { %v807_v24 = vadd.f32 %v795_v14, %v794_v22 }
 0x1ca   :  { %v705_v33 = vpop.f32.mrb[0].mxu1 }
 0x1cb   :  { %v790_v34 = vsel %vm784_vm12, %v705_v33, 0.0  ;;  %v707_v35 = vpop.f32.mrb[1].mxu1 }
 0x1cc   :  { %v801_v36 = vadd.f32 %v800_v19, %v790_v34  ;;  %v791_v37 = vsel %vm785_vm13, %v707_v35, 0.0  ;;  %v709_v38 = vpop.f32.mrb[2].mxu1 }
 0x1cd   :  { %v796_v39 = vsel %vm784_vm12, %v709_v38, 0.0  ;;  %v711_v40 = vpop.f32.mrb[3].mxu1 }
 0x1ce   :  { %v802_v41 = vadd.f32 %v801_v36, %v791_v37  ;;  %v808_v15 = vadd.f32 %v807_v24, %v796_v39  ;;  %v797_v42 = vsel %vm785_vm13, %v711_v40, 0.0  ;;  %v748_v43 = vpop.f32.mrb[4].mxu0 }
 0x1cf   :  { %v792_v11 = vsel %vm2661_vm14, %v748_v43, 0.0  ;;  %v750_v44 = vpop.f32.mrb[5].mxu0 }
 0x1d0   :  { %v809_v45 = vadd.f32 %v808_v15, %v797_v42  ;;  %v803_v21 = vadd.f32 %v802_v41, %v792_v11  ;;  %v793_v46 = vsel %vm2659_vm15, %v750_v44, 0.0  ;;  %v752_v47 = vpop.f32.mrb[6].mxu0 }
 0x1d1   :  { %v798_v20 = vsel %vm2661_vm14, %v752_v47, 0.0  ;;  %v754_v48 = vpop.f32.mrb[7].mxu0 }
 0x1d2   :  { %v810_v49 = vadd.f32 %v809_v45, %v798_v20  ;;  %v799_v50 = vsel %vm2659_vm15, %v754_v48, 0.0  ;;  %v804_v52 = vadd.f32 %v803_v21, %v793_v46 }
 0x1d4   :  { %805 = vadd.xlane.f32.xlu0 %v804_v52  ;;  %v811_v53 = vadd.f32 %v810_v49, %v799_v50  ;;  %v885_v49 = vld [vmem:[%s2644_s2 + $0x8] sm:$0xff] }
 0x1d6   :  { %812 = vadd.xlane.f32.xlu1 %v811_v53 }
 0x1e7   :  { %888 = vperm.xlu1 %1811, %v884_v54  }
 0x1eb   :  { %912 = vperm.xlu1 %1811, %v908_v51  }
 0x1ef   :  { %917 = vperm.xlu1 %1811, %v909_v55  }
 0x1f3   :  { %1008 = vrot.lane.b32.xlu1 %v1886_v3, %s1878_s19 }
 0x1f7   :  { %1054 = vrot.lane.b32.xlu1 %v1886_v3, %s1879_s0 }
 0x1fb   :  { %1146 = vrot.lane.b32.xlu1 %v1886_v3, %s1881_s21 }
 0x1ff   :  { %1216 = vrot.lane.b32.xlu1 %v1886_v3, %s1882_s22 }
 0x203   :  { %1262 = vrot.lane.b32.xlu1 %v1886_v3, %s1883_s23 }
 0x207   :  { %1308 = vrot.lane.b32.xlu1 %v1886_v3, %s1884_s24 }
 0x261   :  { %v806_v57 = vpop.xlane.xlu0 %805 }
 0x262   :  { %v814_v58 = vmul.f32 0.001953125, %v806_v57 }
 0x263   :  { %v813_v59 = vpop.xlane.xlu1 %812 }
 0x264   :  { %v815_v60 = vmul.f32 0.001953125, %v813_v59  ;;  %v816_v61 = vsub.f32 %v2176_v5, %v814_v58  ;;  %v817_v62 = vsub.f32 %v2181_v16, %v814_v58  ;;  %v818_v56 = vsub.f32 %v705_v33, %v814_v58 }
 0x265   :  { %v819_v63 = vsub.f32 %v707_v35, %v814_v58  ;;  %v820_v0 = vsub.f32 %v748_v43, %v814_v58  ;;  %v821_v8 = vsub.f32 %v750_v44, %v814_v58 }
 0x266   :  { %v828_v2 = vsel %vm782_vm10, %v816_v61, 0.0  ;;  %v829_v1 = vsel %vm783_vm11, %v817_v62, 0.0  ;;  %v2252_v4 = vsub.f32 %v2186_v18, %v815_v60  ;;  %v830_v6 = vsel %vm784_vm12, %v818_v56, 0.0 }
 0x267   :  { %v840_v7 = vmul.f32 %v828_v2, %v828_v2  ;;  %v841_v9 = vmul.f32 %v829_v1, %v829_v1  ;;  %v831_v5 = vsel %vm785_vm13, %v819_v63, 0.0  ;;  %v2259_v13 = vsub.f32 %v2191_v23, %v815_v60  ;;  %v889_v58 = vpop.permute.xlu1 %888 }
 0x268   :  { %v2261_v16 = vsub.f32 %v709_v38, %v815_v60  ;;  %v2263_v17 = vsub.f32 %v711_v40, %v815_v60  ;;  %v832_v18 = vsel %vm2661_vm14, %v820_v0, 0.0  ;;  %v842_v19 = vmul.f32 %v830_v6, %v830_v6 }
 0x269   :  { %v852_v22 = vadd.f32 %v841_v9, %v840_v7  ;;  %v834_v14 = vsel %vm782_vm10, %v2252_v4, 0.0  ;;  %v2270_v24 = vsub.f32 %v752_v47, %v815_v60  ;;  %v835_v23 = vsel %vm783_vm11, %v2259_v13, 0.0 }
 0x26a   :  { %v836_v25 = vsel %vm784_vm12, %v2261_v16, 0.0  ;;  %v846_v26 = vmul.f32 %v834_v14, %v834_v14  ;;  %v843_v28 = vmul.f32 %v831_v5, %v831_v5  ;;  %v847_v33 = vmul.f32 %v835_v23, %v835_v23 }
 0x26b   :  { %v853_v30 = vadd.f32 %v852_v22, %v842_v19  ;;  %v833_v34 = vsel %vm2659_vm15, %v821_v8, 0.0  ;;  %v827_v35 = vsub.f32 %v754_v48, %v815_v60  ;;  %v837_v36 = vsel %vm785_vm13, %v2263_v17, 0.0  ;;  %v913_v14 = vpop.permute.xlu1 %912 }
 0x26c   :  { %v844_v37 = vmul.f32 %v832_v18, %v832_v18  ;;  %v848_v39 = vmul.f32 %v836_v25, %v836_v25  ;;  %v859_v40 = vadd.f32 %v847_v33, %v846_v26  ;;  %v838_v41 = vsel %vm2661_vm14, %v2270_v24, 0.0 }
 0x26d   :  { %v854_v38 = vadd.f32 %v853_v30, %v843_v28  ;;  %v845_v15 = vmul.f32 %v833_v34, %v833_v34  ;;  %v849_v43 = vmul.f32 %v837_v36, %v837_v36  ;;  %v839_v44 = vsel %vm2659_vm15, %v827_v35, 0.0 }
 0x26e   :  { %v860_v11 = vadd.f32 %v859_v40, %v848_v39  ;;  %v850_v21 = vmul.f32 %v838_v41, %v838_v41  ;;  %v851_v47 = vmul.f32 %v839_v44, %v839_v44 }
 0x26f   :  { %v855_v42 = vadd.f32 %v854_v38, %v844_v37 }
 0x270   :  { %v861_v46 = vadd.f32 %v860_v11, %v849_v43 }
 0x271   :  { %v856_v45 = vadd.f32 %v855_v42, %v845_v15  ;;  %v918_v15 = vpop.permute.xlu1 %917 }
 0x272   :  { %v862_v20 = vadd.f32 %v861_v46, %v850_v21 }
 0x273   :  { %857 = vadd.xlane.f32.xlu0 %v856_v45 }
 0x274   :  { %v863_v48 = vadd.f32 %v862_v20, %v851_v47 }
 0x277   :  { %864 = vadd.xlane.f32.xlu0 %v863_v48 }
 0x28d   :  { %893 = vperm.xlu0 %1812, %v885_v49  }
 0x291   :  { %1100 = vrot.lane.b32.xlu0 %v1886_v3, %s1880_s20 }
 0x300   :  { %v858_v50 = vpop.xlane.xlu0 %857 }
 0x301   :  { %v866_v52 = vmul.f32 0.001953125, %v858_v50 }
 0x303   :  { %v868_v53 = vadd.f32 1e-05, %v866_v52 }
 0x304   :  { %v865_v54 = vpop.xlane.xlu0 %864 }
 0x305   :  { %1819 = vrsqrt.f32 %v868_v53  ;;  %v867_v51 = vmul.f32 0.001953125, %v865_v54 }
 0x307   :  { %v869_v55 = vadd.f32 1e-05, %v867_v51 }
 0x309   :  { %1821 = vrsqrt.f32 %v869_v55 }
 0x30f   :  { %v1820_v57 = vpop.eup %1819 }
 0x310   :  { %v872_v59 = vmul.f32 %v1820_v57, %v816_v61  ;;  %v873_v60 = vmul.f32 %v1820_v57, %v817_v62  ;;  %v874_v2 = vmul.f32 %v1820_v57, %v818_v56  ;;  %v875_v1 = vmul.f32 %v1820_v57, %v819_v63  ;;  %v894_v63 = vpop.permute.xlu0 %893 }
 0x311   :  { %v876_v6 = vmul.f32 %v1820_v57, %v820_v0  ;;  %v877_v7 = vmul.f32 %v1820_v57, %v821_v8 }
 0x312   :  { %v896_v9 = vmul.f32 %v889_v58, %v872_v59  ;;  %v897_v5 = vmul.f32 %v889_v58, %v873_v60  ;;  %v898_v18 = vmul.f32 %v889_v58, %v874_v2  ;;  %v899_v19 = vmul.f32 %v889_v58, %v875_v1 }
 0x313   :  { %v1822_v22 = vpop.eup %1821  ;;  %v900_v23 = vmul.f32 %v889_v58, %v876_v6  ;;  %v901_v25 = vmul.f32 %v889_v58, %v877_v7 }
 0x314   :  { %v920_v26 = vadd.f32 %v913_v14, %v896_v9  ;;  %v921_v28 = vadd.f32 %v913_v14, %v897_v5  ;;  %v922_v30 = vadd.f32 %v913_v14, %v898_v18  ;;  %v923_v33 = vadd.f32 %v913_v14, %v899_v19 }
 0x315   :  { %v878_v34 = vmul.f32 %v1822_v22, %v2252_v4  ;;  %v879_v61 = vmul.f32 %v1822_v22, %v2259_v13  ;;  %v880_v62 = vmul.f32 %v1822_v22, %v2261_v16  ;;  %v881_v56 = vmul.f32 %v1822_v22, %v2263_v17 }
 0x316   :  { %v924_v0 = vadd.f32 %v913_v14, %v900_v23  ;;  %v925_v8 = vadd.f32 %v913_v14, %v901_v25  ;;  %vm932_vm9 = vcmp.gt.f32.partialorder %v920_v26, 0.0  ;;  %vm933_vm8 = vcmp.gt.f32.partialorder %v921_v28, 0.0 }
 0x317   :  { %vm934_vm7 = vcmp.gt.f32.partialorder %v922_v30, 0.0  ;;  %v882_v36 = vmul.f32 %v1822_v22, %v2270_v24  ;;  %v883_v37 = vmul.f32 %v1822_v22, %v827_v35  ;;  %vm935_vm6 = vcmp.gt.f32.partialorder %v923_v33, 0.0 }
 0x318   :  { %v902_v38 = vmul.f32 %v894_v63, %v878_v34  ;;  %v903_v39 = vmul.f32 %v894_v63, %v879_v61  ;;  %v904_v40 = vmul.f32 %v894_v63, %v880_v62  ;;  %v905_v4 = vmul.f32 %v894_v63, %v881_v56 }
 0x319   :  { %v944_v41 = vmul.f32 0.2, %v920_v26  ;;  %v945_v13 = vmul.f32 0.2, %v921_v28  ;;  %v906_v16 = vmul.f32 %v894_v63, %v882_v36  ;;  %v907_v42 = vmul.f32 %v894_v63, %v883_v37 }
 0x31a   :  { %v926_v17 = vadd.f32 %v918_v15, %v902_v38  ;;  %v927_v43 = vadd.f32 %v918_v15, %v903_v39  ;;  %v928_v11 = vadd.f32 %v918_v15, %v904_v40  ;;  %v929_v44 = vadd.f32 %v918_v15, %v905_v4  ;;  %v2393_v39 = vld [vmem:[%s2646_s4 + $0x4] ss:$8 sps:$4 sm:$0xff]  }
 0x31b   :  { %v946_v45 = vmul.f32 0.2, %v922_v30  ;;  %v947_v21 = vmul.f32 0.2, %v923_v33  ;;  %v930_v46 = vadd.f32 %v918_v15, %v906_v16  ;;  %v931_v47 = vadd.f32 %v918_v15, %v907_v42 }
 0x31c   :  { %v948_v24 = vmul.f32 0.2, %v924_v0  ;;  %v949_v35 = vmul.f32 0.2, %v925_v8  ;;  %vm938_vm5 = vcmp.gt.f32.partialorder %v926_v17, 0.0  ;;  %vm939_vm4 = vcmp.gt.f32.partialorder %v927_v43, 0.0 }
 0x31d   :  { %vm940_vm3 = vcmp.gt.f32.partialorder %v928_v11, 0.0  ;;  %vm941_vm2 = vcmp.gt.f32.partialorder %v929_v44, 0.0  ;;  %v950_v20 = vmul.f32 0.2, %v926_v17  ;;  %v951_v48 = vmul.f32 0.2, %v927_v43 }
 0x31e   :  { %v2299_v49 = vsel %vm932_vm9, %v920_v26, %v944_v41  ;;  %v952_v50 = vmul.f32 0.2, %v928_v11  ;;  %v953_v52 = vmul.f32 0.2, %v929_v44  ;;  %v954_v53 = vmul.f32 0.2, %v930_v46 }
 0x31f   :  { %vm942_vm1 = vcmp.gt.f32.partialorder %v930_v46, 0.0  ;;  %vm943_vm15 = vcmp.gt.f32.partialorder %v931_v47, 0.0  ;;  %v955_v54 = vmul.f32 0.2, %v931_v47  ;;  %v2301_v51 = vsel %vm938_vm5, %v926_v17, %v950_v20 }
 0x320   :  { %vm936_vm0 = vcmp.gt.f32.partialorder %v924_v0, 0.0  ;;  %vm937_vm14 = vcmp.gt.f32.partialorder %v925_v8, 0.0  ;;  %v2303_v55 = vsel %vm939_vm4, %v927_v43, %v951_v48  ;;  %v976_v57 = vsel %vm782_vm10, %v2301_v51, 0.0 }
 0x321   :  { %v2309_v58 = vsel %vm933_vm8, %v921_v28, %v945_v13  ;;  %v2312_v59 = vsel %vm934_vm7, %v922_v30, %v946_v45  ;;  %v970_v60 = vsel %vm782_vm10, %v2299_v49, 0.0  ;;  %v2318_v2 = vsel %vm941_vm2, %v929_v44, %v953_v52  ;;  %v1009_v13 = vpop.permute.xlu1 %1008 }
 0x322   :  { %v2321_v1 = vsel %vm940_vm3, %v928_v11, %v952_v50  ;;  %v2323_v6 = vsel %vm942_vm1, %v930_v46, %v954_v53  ;;  %v2325_v7 = vsel %vm943_vm15, %v931_v47, %v955_v54  ;;  %v982_v9 = vpack.c.bf16 %v976_v57, %v970_v60  ;;  %v1101_v11 = vpop.permute.xlu0 %1100 }
 0x323   :  { %v2328_v5 = vsel %vm935_vm6, %v923_v33, %v947_v21  ;;  %v2330_v18 = vsel %vm936_vm0, %v924_v0, %v948_v24  ;;  %v2332_v19 = vsel %vm937_vm14, %v925_v8, %v949_v35  ;;  %v977_v22 = vsel %vm783_vm11, %v2303_v55, 0.0 }
 0x324   :  { %1102 = vrot.lane.b32.xlu0 %v982_v9, %s1880_s20  ;;  %1010 = vrot.lane.b32.xlu1 %v982_v9, %s1878_s19  ;;  %v1779_v14 = vpack.c.bf16 %v2303_v55, %v2309_v58  ;;  %v1782_v23 = vpack.c.bf16 %v2301_v51, %v2299_v49  ;;  %v1785_v25 = vpack.c.bf16 %v2318_v2, %v2328_v5  ;;  %v971_v26 = vsel %vm783_vm11, %v2309_v58, 0.0 }
 0x325   :  { %v1788_v28 = vpack.c.bf16 %v2321_v1, %v2312_v59  ;;  %v1791_v30 = vpack.c.bf16 %v2325_v7, %v2332_v19  ;;  %v1794_v33 = vpack.c.bf16 %v2323_v6, %v2330_v18  ;;  %v983_v34 = vpack.c.bf16 %v977_v22, %v971_v26  ;;  %v1055_v15 = vpop.permute.xlu1 %1054 }
 0x326   :  { %v978_v61 = vsel %vm784_vm12, %v2321_v1, 0.0  ;;  %v972_v62 = vsel %vm784_vm12, %v2312_v59, 0.0  ;;  %v979_v63 = vsel %vm785_vm13, %v2318_v2, 0.0  ;;  %v973_v0 = vsel %vm785_vm13, %v2328_v5, 0.0 }
 0x327   :  { %v984_v56 = vpack.c.bf16 %v978_v61, %v972_v62  ;;  %v985_v8 = vpack.c.bf16 %v979_v63, %v973_v0  ;;  %vm2662_vm0 = vcmp.eq.s32.totalorder %v2201_v31, 1  ;;  %vm2664_vm2 = vcmask 130048  }
 0x328   :  { %1150 = vrot.lane.b32.xlu0 %v983_v34, %s1881_s21  ;;  %1012 = vrot.lane.b32.xlu1 %v983_v34, %s1878_s19  ;;  %v980_v36 = vsel %vm2662_vm0, %v2323_v6, 0.0  ;;  %vm2663_vm1 = vmmov %vm2662_vm0  ;;  %vm2666_vm4 = vcmp.eq.s32.totalorder %v2204_v32, 1  ;;  %vm2668_vm6 = vcmask 154624   ;;  %vm2670_vm8 = vcmask 146432  }
 0x329   :  { %v974_v37 = vsel %vm2663_vm1, %v2330_v18, 0.0  ;;  %1775 = vmatprep.mubr.msk.bf16.mxu1 %vm2664_vm2, %v2393_v39  ;;  %vm2665_vm3 = vmmov %vm2664_vm2  ;;  %v981_v40 = vsel %vm2666_vm4, %v2325_v7, 0.0  ;;  %v1147_v16 = vpop.permute.xlu1 %1146  ;;  %vm2672_vm15 = vcmask 138240   ;;  %vm2674_vm0 = vcmask 7168  }
 0x32a   :  { %v986_v38 = vpack.c.bf16 %v980_v36, %v974_v37  ;;  %1776 = vmatprep.mubr.msk.bf16.mxu0 %vm2665_vm3, %v2393_v39  ;;  %vm2667_vm5 = vmmov %vm2666_vm4  ;;  %vm2676_vm4 = vcmask 1039360  }
 0x32b   :  { %v975_v4 = vsel %vm2667_vm5, %v2332_v19, 0.0  ;;  %vm2669_vm7 = vmmov %vm2668_vm6 }
 0x32c   :  { %1206 = vrot.lane.b32.xlu0 %v983_v34, %s1882_s22  ;;  %1056 = vrot.lane.b32.xlu1 %v982_v9, %s1879_s0  ;;  %v987_v41 = vpack.c.bf16 %v981_v40, %v975_v4  ;;  %vm2671_vm14 = vmmov %vm2670_vm8 }
 0x32d   :  { %v2435_v42 = vpop.permute.xlu1 %1216  ;;  %vm2673_vm9 = vmmov %vm2672_vm15 }
 0x32e   :  { %vm2675_vm1 = vmmov %vm2674_vm0 }
 0x32f   :  { %vm1778_vm2 = vmpackc.low %vm783_vm11, %vm783_vm11 }
 0x330   :  { %1204 = vrot.lane.b32.xlu0 %v982_v9, %s1882_s22  ;;  %1058 = vrot.lane.b32.xlu1 %v983_v34, %s1879_s0  ;;  %vm1781_vm3 = vmpackc.low %vm782_vm10, %vm782_vm10 }
 0x331   :  { %v2437_v17 = vpop.permute.xlu1 %1262  ;;  %vm2677_vm5 = vmmov %vm2676_vm4 }
 0x334   :  { %1254 = vrot.lane.b32.xlu0 %v984_v56, %s1883_s23  ;;  %1104 = vrot.lane.b32.xlu1 %v983_v34, %s1880_s20 }
 0x335   :  { %v2439_v43 = vpop.permute.xlu1 %1308 }
 0x338   :  { %1298 = vrot.lane.b32.xlu0 %v983_v34, %s1884_s24  ;;  %1148 = vrot.lane.b32.xlu1 %v982_v9, %s1881_s21 }
 0x33c   :  { %1296 = vrot.lane.b32.xlu0 %v982_v9, %s1884_s24  ;;  %1208 = vrot.lane.b32.xlu1 %v984_v56, %s1882_s22 }
 0x340   :  { %1016 = vrot.lane.b32.xlu0 %v985_v8, %s1878_s19  ;;  %1252 = vrot.lane.b32.xlu1 %v983_v34, %s1883_s23 }
 0x344   :  { %1346 = vrot.lane.b32.xlu0 %v984_v56, %s1885_s27  ;;  %1250 = vrot.lane.b32.xlu1 %v982_v9, %s1883_s23 }
 0x348   :  { %1018 = vrot.lane.b32.xlu0 %v986_v38, %s1878_s19  ;;  %1300 = vrot.lane.b32.xlu1 %v984_v56, %s1884_s24 }
 0x34c   :  { %1060 = vrot.lane.b32.xlu0 %v984_v56, %s1879_s0  ;;  %1014 = vrot.lane.b32.xlu1 %v984_v56, %s1878_s19 }
 0x350   :  { %1064 = vrot.lane.b32.xlu0 %v986_v38, %s1879_s0  ;;  %1344 = vrot.lane.b32.xlu1 %v983_v34, %s1885_s27 }
 0x354   :  { %1106 = vrot.lane.b32.xlu0 %v984_v56, %s1880_s20  ;;  %1342 = vrot.lane.b32.xlu1 %v982_v9, %s1885_s27 }
 0x358   :  { %1110 = vrot.lane.b32.xlu0 %v986_v38, %s1880_s20  ;;  %1020 = vrot.lane.b32.xlu1 %v987_v41, %s1878_s19 }
 0x35c   :  { %1152 = vrot.lane.b32.xlu0 %v984_v56, %s1881_s21  ;;  %1062 = vrot.lane.b32.xlu1 %v985_v8, %s1879_s0 }
 0x360   :  { %1156 = vrot.lane.b32.xlu0 %v986_v38, %s1881_s21  ;;  %1066 = vrot.lane.b32.xlu1 %v987_v41, %s1879_s0 }
 0x364   :  { %1210 = vrot.lane.b32.xlu0 %v985_v8, %s1882_s22  ;;  %1108 = vrot.lane.b32.xlu1 %v985_v8, %s1880_s20 }
 0x368   :  { %1214 = vrot.lane.b32.xlu0 %v987_v41, %s1882_s22  ;;  %1112 = vrot.lane.b32.xlu1 %v987_v41, %s1880_s20 }
 0x36c   :  { %1256 = vrot.lane.b32.xlu0 %v985_v8, %s1883_s23  ;;  %1154 = vrot.lane.b32.xlu1 %v985_v8, %s1881_s21 }
 0x370   :  { %1260 = vrot.lane.b32.xlu0 %v987_v41, %s1883_s23  ;;  %1158 = vrot.lane.b32.xlu1 %v987_v41, %s1881_s21 }
 0x374   :  { %1302 = vrot.lane.b32.xlu0 %v985_v8, %s1884_s24  ;;  %1212 = vrot.lane.b32.xlu1 %v986_v38, %s1882_s22 }
 0x378   :  { %1306 = vrot.lane.b32.xlu0 %v987_v41, %s1884_s24  ;;  %1258 = vrot.lane.b32.xlu1 %v986_v38, %s1883_s23 }
 0x37c   :  { %1348 = vrot.lane.b32.xlu0 %v985_v8, %s1885_s27  ;;  %1304 = vrot.lane.b32.xlu1 %v986_v38, %s1884_s24 }
 0x380   :  { %1352 = vrot.lane.b32.xlu0 %v987_v41, %s1885_s27  ;;  %1350 = vrot.lane.b32.xlu1 %v986_v38, %s1885_s27 }
 0x384   :  { %1354 = vrot.lane.b32.xlu1 %v1886_v3, %s1885_s27 }
 0x396   :  { %v1011_v44 = vpop.permute.xlu1 %1010  ;;  %v1103_v45 = vpop.permute.xlu0 %1102 }
 0x397   :  { %v1022_v24 = vsel %vm2669_vm7, %v1009_v13, %v1011_v44  ;;  %v1114_v60 = vsel %vm2673_vm9, %v1101_v11, %v1103_v45 }
 0x39a   :  { %v1013_v21 = vpop.permute.xlu1 %1012  ;;  %v2441_v46 = vpop.permute.xlu0 %1150 }
 0x39b   :  { %v1023_v47 = vsel %vm2668_vm6, %v1011_v44, %v1013_v21  ;;  %vm2678_vm6 = vcmask 908288  }
 0x39c   :  { %1442 = vmatprep.subr.bf16.mxu1 %v1023_v47  ;;  %vm2679_vm7 = vmmov %vm2678_vm6  ;;  %v2495_v47 = vld [vmem:[%s2646_s4] ss:$8 sps:$4 sm:$0xff]  }
 0x39d   :  { %1443 = vmatpush1.bf16.msra.mxu1 %v1022_v24 }
 0x39e   :  { %v1057_v35 = vpop.permute.xlu1 %1056  ;;  %v1207_v3 = vpop.permute.xlu0 %1206 }
 0x39f   :  { %v1068_v52 = vsel %vm2671_vm14, %v1055_v15, %v1057_v35 }
 0x3a2   :  { %v2445_v20 = vpop.permute.xlu1 %1058  ;;  %v1205_v48 = vpop.permute.xlu0 %1204 }
 0x3a3   :  { %v1069_v50 = vsel %vm2670_vm8, %v1057_v35, %v2445_v20  ;;  %v1218_v8 = vsel %vm2677_vm5, %v1205_v48, %v1207_v3  ;;  %vm2680_vm8 = vcmask 900096   ;;  %vm2689_vm5 = vcmask 146432  }
 0x3a4   :  { %1444 = vmatprep.subr.bf16.mxu1 %v1069_v50  ;;  %vm2681_vm14 = vmmov %vm2680_vm8 }
 0x3a5   :  { %1445 = vmatpush1.bf16.msra.mxu1 %v1068_v52 }
 0x3a6   :  { %v2450_v53 = vpop.permute.xlu1 %1104  ;;  %v2452_v54 = vpop.permute.xlu0 %1254 }
 0x3a7   :  { %v1115_v57 = vsel %vm2672_vm15, %v1103_v45, %v2450_v53  ;;  %vm2682_vm15 = vcmask 154624  }
 0x3a8   :  { %1446 = vmatprep.subr.bf16.mxu1 %v1115_v57  ;;  %vm2683_vm9 = vmmov %vm2682_vm15 }
 0x3a9   :  { %1447 = vmatpush1.bf16.msra.mxu1 %v1114_v60 }
 0x3aa   :  { %v1149_v9 = vpop.permute.xlu1 %1148  ;;  %v1299_v22 = vpop.permute.xlu0 %1298 }
 0x3ab   :  { %v1160_v26 = vsel %vm2674_vm0, %v1147_v16, %v1149_v9  ;;  %v1161_v34 = vsel %vm2675_vm1, %v1149_v9, %v2441_v46  ;;  %vm2684_vm0 = vcmask 891904  }
 0x3ac   :  { %1448 = vmatprep.subr.bf16.mxu1 %v1161_v34  ;;  %vm2685_vm1 = vmmov %vm2684_vm0 }
 0x3ad   :  { %1449 = vmatpush1.bf16.msra.mxu1 %v1160_v26 }
 0x3ae   :  { %v2463_v61 = vpop.permute.xlu1 %1208  ;;  %1780 = vmatprep.subr.msk.bf16.mxu1 %vm1778_vm2, %v1779_v14  ;;  %v1297_v62 = vpop.permute.xlu0 %1296  ;;  %vm2686_vm2 = vmmov %vm2683_vm9 }
 0x3af   :  { %v1219_v56 = vsel %vm2676_vm4, %v1207_v3, %v2463_v61  ;;  %v1310_v37 = vsel %vm2681_vm14, %v1297_v62, %v1299_v22  ;;  %vm2688_vm4 = vcmask 130048   ;;  %vm2693_vm14 = vcmask 138240  }
 0x3b1   :  { %1783 = vmatpush1.bf16.msk.msra.mxu1 %vm1781_vm3, %v1782_v23  ;;  %vm2687_vm3 = vmmov %vm2686_vm2 }
 0x3b2   :  { %v1253_v63 = vpop.permute.xlu1 %1252  ;;  %1452 = vmatprep.subr.bf16.mxu1 %v1219_v56  ;;  %v1017_v0 = vpop.permute.xlu0 %1016 }
 0x3b3   :  { %v1265_v55 = vsel %vm2678_vm6, %v1253_v63, %v2452_v54  ;;  %vm2690_vm6 = vmmov %vm2689_vm5 }
 0x3b5   :  { %1453 = vmatpush1.bf16.msra.mxu1 %v1218_v8 }
 0x3b6   :  { %v1251_v58 = vpop.permute.xlu1 %1250  ;;  %1454 = vmatprep.subr.bf16.mxu1 %v1265_v55  ;;  %v2479_v14 = vpop.permute.xlu0 %1346 }
 0x3b7   :  { %v1264_v36 = vsel %vm2679_vm7, %v1251_v58, %v1253_v63  ;;  %vm2691_vm7 = vmmov %vm2689_vm5 }
 0x3b9   :  { %1455 = vmatpush1.bf16.msra.mxu1 %v1264_v36 }
 0x3ba   :  { %v2482_v49 = vpop.permute.xlu1 %1300  ;;  %v1019_v51 = vpop.permute.xlu0 %1018 }
 0x3bb   :  { %v1311_v23 = vsel %vm2680_vm8, %v1299_v22, %v2482_v49  ;;  %v1026_v3 = vsel %vm2687_vm3, %v1017_v0, %v1019_v51  ;;  %vm2692_vm8 = vmmov %vm2689_vm5 }
 0x3bc   :  { %1456 = vmatprep.subr.bf16.mxu1 %v1311_v23 }
 0x3bd   :  { %1457 = vmatpush1.bf16.msra.mxu1 %v1310_v37 }
 0x3be   :  { %v1015_v38 = vpop.permute.xlu1 %1014  ;;  %v1061_v40 = vpop.permute.xlu0 %1060 }
 0x3bf   :  { %v1024_v4 = vsel %vm2682_vm15, %v1013_v21, %v1015_v38  ;;  %v1025_v41 = vsel %vm2683_vm9, %v1015_v38, %v1017_v0  ;;  %v1070_v57 = vsel %vm2690_vm6, %v2445_v20, %v1061_v40  ;;  %vm2694_vm15 = vmmov %vm2693_vm14  ;;  %vm2700_vm6 = vcmp.eq.s32.totalorder %v2204_v32, 1 }
 0x3c0   :  { %1485 = vmatprep.subr.bf16.mxu0 %v1025_v41  ;;  %vm2695_vm9 = vmmov %vm2693_vm14 }
 0x3c1   :  { %1486 = vmatpush1.bf16.msra.mxu0 %v1024_v4 }
 0x3c2   :  { %v1345_v13 = vpop.permute.xlu1 %1344  ;;  %v1065_v15 = vpop.permute.xlu0 %1064 }
 0x3c3   :  { %v1357_v16 = vsel %vm2684_vm0, %v1345_v13, %v2479_v14  ;;  %vm2696_vm0 = vmmov %vm2695_vm9 }
 0x3c4   :  { %1458 = vmatprep.subr.bf16.mxu1 %v1357_v16 }
 0x3c6   :  { %v1343_v11 = vpop.permute.xlu1 %1342  ;;  %v1107_v44 = vpop.permute.xlu0 %1106 }
 0x3c7   :  { %v1356_v45 = vsel %vm2685_vm1, %v1343_v11, %v1345_v13  ;;  %v1116_v56 = vsel %vm2694_vm15, %v2450_v53, %v1107_v44  ;;  %vm2697_vm1 = vcmask 7168  }
 0x3c8   :  { %1459 = vmatpush1.bf16.msra.mxu1 %v1356_v45  ;;  %vm2698_vm3 = vmmov %vm2697_vm1 }
 0x3ca   :  { %v1021_v21 = vpop.permute.xlu1 %1020  ;;  %v1111_v24 = vpop.permute.xlu0 %1110 }
 0x3cb   :  { %v1027_v35 = vsel %vm2686_vm2, %v1019_v51, %v1021_v21  ;;  %1475 = vmatmul.mubr.bf16.vlgmr.msra.gmra.mrb[4].mxu1 %v2495_v47  ;;  %vm1784_vm2 = vmpackc.low %vm785_vm13, %vm785_vm13 }
 0x3cc   :  { %1528 = vmatprep.subr.bf16.mxu1 %v1027_v35  ;;  %1777 = vmatprep.mubr.msk.bf16.mxu1 %vm2688_vm4, %v2393_v39  ;;  %vm1787_vm4 = vmpackc.low %vm784_vm12, %vm784_vm12 }
 0x3cd   :  { %1529 = vmatpush1.bf16.msra.mxu1 %v1026_v3 }
 0x3ce   :  { %v1063_v48 = vpop.permute.xlu1 %1062  ;;  %v1153_v50 = vpop.permute.xlu0 %1152 }
 0x3cf   :  { %v1071_v52 = vsel %vm2689_vm5, %v1061_v40, %v1063_v48  ;;  %v1072_v26 = vsel %vm2692_vm8, %v1063_v48, %v1065_v15  ;;  %v1162_v53 = vsel %vm2698_vm3, %v2441_v46, %v1153_v50  ;;  %vm2699_vm5 = vmmov %vm2697_vm1 }
 0x3d0   :  { %1487 = vmatprep.subr.bf16.mxu0 %v1071_v52  ;;  %vm2701_vm8 = vmmov %vm2697_vm1 }
 0x3d1   :  { %1488 = vmatpush1.bf16.msra.mxu0 %v1070_v57 }
 0x3d2   :  { %v1067_v60 = vpop.permute.xlu1 %1066  ;;  %v1157_v9 = vpop.permute.xlu0 %1156 }
 0x3d3   :  { %v1073_v22 = vsel %vm2691_vm7, %v1065_v15, %v1067_v60  ;;  %vm1790_vm7 = vmpackc.low %vm2700_vm6, %vm2700_vm6  ;;  %vm2710_vm6 = vcmask 900096  }
 0x3d4   :  { %1530 = vmatprep.subr.bf16.mxu1 %v1073_v22 }
 0x3d5   :  { %1531 = vmatpush1.bf16.msra.mxu1 %v1072_v26 }
 0x3d6   :  { %v1109_v34 = vpop.permute.xlu1 %1108  ;;  %v1211_v39 = vpop.permute.xlu0 %1210 }
 0x3d7   :  { %v1117_v62 = vsel %vm2693_vm14, %v1107_v44, %v1109_v34  ;;  %v1118_v8 = vsel %vm2696_vm0, %v1109_v34, %v1111_v24  ;;  %vm2702_vm14 = vcmp.eq.s32.totalorder %v2201_v31, 1 }
 0x3d8   :  { %1489 = vmatprep.subr.bf16.mxu0 %v1117_v62  ;;  %vm1793_vm15 = vmpackc.low %vm2702_vm14, %vm2702_vm14 }
 0x3d9   :  { %1490 = vmatpush1.bf16.msra.mxu0 %v1116_v56  ;;  %vm2713_vm14 = vmmov %vm2710_vm6 }
 0x3da   :  { %v1113_v20 = vpop.permute.xlu1 %1112  ;;  %v1215_v63 = vpop.permute.xlu0 %1214 }
 0x3db   :  { %v1119_v0 = vsel %vm2695_vm9, %v1111_v24, %v1113_v20  ;;  %vm2703_vm9 = vcmask 1039360  }
 0x3dc   :  { %1532 = vmatprep.subr.bf16.mxu1 %v1119_v0  ;;  %vm2704_vm0 = vmmov %vm2703_vm9 }
 0x3dd   :  { %1533 = vmatpush1.bf16.msra.mxu1 %v1118_v8  ;;  %v1220_v38 = vsel %vm2704_vm0, %v2463_v61, %v1211_v39 }
 0x3de   :  { %v1155_v55 = vpop.permute.xlu1 %1154  ;;  %v1257_v58 = vpop.permute.xlu0 %1256 }
 0x3df   :  { %v1163_v36 = vsel %vm2697_vm1, %v1153_v50, %v1155_v55  ;;  %v1164_v46 = vsel %vm2701_vm8, %v1155_v55, %v1157_v9  ;;  %vm2705_vm1 = vmmov %vm2704_vm0 }
 0x3e0   :  { %1491 = vmatprep.subr.bf16.mxu0 %v1163_v36  ;;  %v1223_v59 = vsel %vm2705_vm1, %v1215_v63, %v2435_v42 }
 0x3e1   :  { %1492 = vmatpush1.bf16.msra.mxu0 %v1162_v53 }
 0x3e2   :  { %v1159_v51 = vpop.permute.xlu1 %1158  ;;  %1786 = vmatprep.subr.msk.bf16.mxu0 %vm1784_vm2, %v1785_v25  ;;  %v1261_v23 = vpop.permute.xlu0 %1260  ;;  %vm2706_vm2 = vcmask 908288  }
 0x3e3   :  { %v1165_v37 = vsel %vm2699_vm5, %v1157_v9, %v1159_v51  ;;  %vm2707_vm3 = vmmov %vm2706_vm2 }
 0x3e4   :  { %1534 = vmatprep.subr.bf16.mxu1 %v1165_v37  ;;  %vm2709_vm5 = vmmov %vm2706_vm2 }
 0x3e5   :  { %1789 = vmatpush1.bf16.msk.msra.mxu0 %vm1787_vm4, %v1788_v28  ;;  %1535 = vmatpush1.bf16.msra.mxu1 %v1164_v46  ;;  %v1266_v28 = vsel %vm2707_vm3, %v2452_v54, %v1257_v58  ;;  %vm2708_vm4 = vmmov %vm2704_vm0  ;;  %v1269_v6 = vsel %vm2709_vm5, %v1261_v23, %v2437_v17  ;;  %vm2719_vm3 = vcmp.eq.s32.totalorder %v2201_v31, 1  ;;  %v1668_v31 = vld [vmem:[%s2647_s5 + $0x8] sm:$0xff] }
 0x3e6   :  { %v1213_v2 = vpop.permute.xlu1 %1212  ;;  %1792 = vmatprep.subr.msk.bf16.mxu1 %vm1790_vm7, %v1791_v30  ;;  %v1303_v5 = vpop.permute.xlu0 %1302  ;;  %vm2711_vm7 = vmmov %vm2710_vm6 }
 0x3e7   :  { %v1221_v25 = vsel %vm2703_vm9, %v1211_v39, %v1213_v2  ;;  %v1222_v30 = vsel %vm2708_vm4, %v1213_v2, %v1215_v63  ;;  %v1312_v61 = vsel %vm2711_vm7, %v2482_v49, %v1303_v5  ;;  %vm2712_vm8 = vmmov %vm2706_vm2  ;;  %vm2720_vm4 = vcmp.eq.s32.totalorder %v2204_v32, 1 }
 0x3e8   :  { %1495 = vmatprep.subr.bf16.mxu0 %v1221_v25  ;;  %vm2715_vm9 = vmmov %vm2710_vm6  ;;  %v1691_v25 = vld [vmem:[%s2648_s6] sm:$0xff] }
 0x3e9   :  { %1496 = vmatpush1.bf16.msra.mxu0 %v1220_v38  ;;  %1795 = vmatpush1.bf16.msk.msra.mxu1 %vm1793_vm15, %v1794_v33  ;;  %vm2714_vm15 = vcmask 891904   ;;  %vm2721_vm5 = vmmov %vm2719_vm3  ;;  %v1692_v38 = vld [vmem:[%s2648_s6 + $0x8] sm:$0xff] }
 0x3ea   :  { %v1259_v1 = vpop.permute.xlu1 %1258  ;;  %1538 = vmatprep.subr.bf16.mxu1 %v1223_v59  ;;  %v1307_v7 = vpop.permute.xlu0 %1306  ;;  %vm2716_vm0 = vmmov %vm2714_vm15 }
 0x3eb   :  { %v1267_v19 = vsel %vm2706_vm2, %v1257_v58, %v1259_v1  ;;  %v1268_v40 = vsel %vm2712_vm8, %v1259_v1, %v1261_v23  ;;  %v1315_v54 = vsel %vm2713_vm14, %v1307_v7, %v2439_v43  ;;  %vm2717_vm1 = vmmov %vm2716_vm0 }
 0x3ec   :  { %1497 = vmatprep.subr.bf16.mxu0 %v1267_v19  ;;  %vm2718_vm2 = vmmov %vm2716_vm0 }
 0x3ed   :  { %1498 = vmatpush1.bf16.msra.mxu0 %v1266_v28  ;;  %1539 = vmatpush1.bf16.msra.mxu1 %v1222_v30  ;;  %vm2723_vm7 = vmmov %vm2719_vm3 }
 0x3ee   :  { %v1305_v18 = vpop.permute.xlu1 %1304  ;;  %1540 = vmatprep.subr.bf16.mxu1 %v1269_v6  ;;  %v1349_v33 = vpop.permute.xlu0 %1348  ;;  %vm2724_vm8 = vmmov %vm2720_vm4 }
 0x3ef   :  { %v1313_v42 = vsel %vm2710_vm6, %v1303_v5, %v1305_v18  ;;  %v1314_v41 = vsel %vm2715_vm9, %v1305_v18, %v1307_v7  ;;  %v1358_v13 = vsel %vm2716_vm0, %v2479_v14, %v1349_v33  ;;  %vm2722_vm6 = vmmov %vm2720_vm4  ;;  %v1667_v5 = vld [vmem:[%s2647_s5] sm:$0xff]  ;;  %s1887_s5 = smov [#allocation7]  }
 0x3f0   :  { %1499 = vmatprep.subr.bf16.mxu0 %v1313_v42  ;;  %s1756_s23 = sshll.u32 %s1887_s5, 4  ;;  %s1757_s23 = int_to_ptr.vmem [resolvable:$true] %s1756_s23 }
 0x3f1   :  { %1500 = vmatpush1.bf16.msra.mxu0 %v1312_v61  ;;  %1541 = vmatpush1.bf16.msra.mxu1 %v1268_v40  ;;  %s1849_s24 = scalar_lea.vmem %s1757_s23, 1536  ;;  %p1854_p9 = scmp.lt.s32.totalorder %s1757_s23, %s1757_s23 }
 0x3f2   :  { %v1351_v4 = vpop.permute.xlu1 %1350  ;;  %1542 = vmatprep.subr.bf16.mxu1 %v1315_v54  ;;  %v1353_v15 = vpop.permute.xlu0 %1352  ;;  %p1850_p8 = scmp.ne.s32.totalorder %s1757_s23, %s1849_s24  ;;  %p1855_p10 = scmp.lt.s32.totalorder %s1849_s24, %s1849_s24 }
 0x3f3   :  { %v1359_v17 = vsel %vm2714_vm15, %v1349_v33, %v1351_v4  ;;  %v1360_v11 = vsel %vm2718_vm2, %v1351_v4, %v1353_v15 }
 0x3f4   :  { %1501 = vmatprep.subr.bf16.mxu0 %v1359_v17  ;;  %p1856_p11 = por %p1855_p10, %p1854_p9 }
 0x3f5   :  { %1502 = vmatpush1.bf16.msra.mxu0 %v1358_v13  ;;  %1543 = vmatpush1.bf16.msra.mxu1 %v1314_v41 }
 0x3f6   :  { %v1355_v49 = vpop.permute.xlu1 %1354  ;;  %p1857_p12 = pnand %p1856_p11, %p1850_p8 }
 0x3f7   :  { %v1361_v16 = vsel %vm2717_vm1, %v1353_v15, %v1355_v49 }
 0x3f8   :  { %1518 = vmatmul.mubr.bf16.vlgmr.msra.gmra.mrb[8].mxu0 %v2495_v47  ;;  %1544 = vmatprep.subr.bf16.mxu1 %v1361_v16 }
 0x3f9   :  { %1545 = vmatpush1.bf16.msra.mxu1 %v1360_v11 }
 0x3fc   :  { %1561 = vmatmul.mubr.bf16.vlgmr.msra.gmra.mrb[8].mxu1 %v2495_v47 }
 0x49e   :  { %v1476_v43 = vpop.f32.mrb[4].mxu1 }
 0x49f   :  { %v1571_v44 = vsel %vm782_vm10, %v1476_v43, 0.0  ;;  %v1478_v14 = vpop.f32.mrb[5].mxu1 }
 0x4a0   :  { %v1572_v45 = vsel %vm783_vm11, %v1478_v14, 0.0  ;;  %v1480_v21 = vpop.f32.mrb[6].mxu1 }
 0x4a1   :  { %v1583_v24 = vadd.f32 %v1572_v45, %v1571_v44  ;;  %v1577_v35 = vsel %vm782_vm10, %v1480_v21, 0.0  ;;  %v1482_v3 = vpop.f32.mrb[7].mxu1 }
 0x4a2   :  { %v1578_v48 = vsel %vm783_vm11, %v1482_v3, 0.0 }
 0x4a3   :  { %v1590_v50 = vadd.f32 %v1578_v48, %v1577_v35 }
 0x4cb   :  { %v1519_v52 = vpop.f32.mrb[8].mxu0 }
 0x4cc   :  { %v1573_v47 = vsel %vm784_vm12, %v1519_v52, 0.0  ;;  %v1521_v57 = vpop.f32.mrb[9].mxu0 }
 0x4cd   :  { %v1584_v60 = vadd.f32 %v1583_v24, %v1573_v47  ;;  %v1574_v9 = vsel %vm785_vm13, %v1521_v57, 0.0  ;;  %v1523_v22 = vpop.f32.mrb[10].mxu0 }
 0x4ce   :  { %v1579_v26 = vsel %vm784_vm12, %v1523_v22, 0.0  ;;  %v1525_v34 = vpop.f32.mrb[11].mxu0 }
 0x4cf   :  { %v1585_v39 = vadd.f32 %v1584_v60, %v1574_v9  ;;  %v1591_v62 = vadd.f32 %v1590_v50, %v1579_v26  ;;  %v1580_v56 = vsel %vm785_vm13, %v1525_v34, 0.0  ;;  %v1562_v20 = vpop.f32.mrb[8].mxu1 }
 0x4d0   :  { %v1575_v63 = vsel %vm2719_vm3, %v1562_v20, 0.0  ;;  %v1564_v0 = vpop.f32.mrb[9].mxu1 }
 0x4d1   :  { %v1592_v8 = vadd.f32 %v1591_v62, %v1580_v56  ;;  %v1586_v55 = vadd.f32 %v1585_v39, %v1575_v63  ;;  %v1576_v58 = vsel %vm2720_vm4, %v1564_v0, 0.0  ;;  %v1566_v36 = vpop.f32.mrb[10].mxu1 }
 0x4d2   :  { %v1581_v53 = vsel %vm2721_vm5, %v1566_v36, 0.0  ;;  %v1568_v51 = vpop.f32.mrb[11].mxu1 }
 0x4d3   :  { %v1587_v23 = vadd.f32 %v1586_v55, %v1576_v58  ;;  %v1593_v37 = vadd.f32 %v1592_v8, %v1581_v53  ;;  %v1582_v46 = vsel %vm2722_vm6, %v1568_v51, 0.0 }
 0x4d5   :  { %v1594_v2 = vadd.f32 %v1593_v37, %v1582_v46  ;;  %1588 = vadd.xlane.f32.xlu0 %v1587_v23 }
 0x4d7   :  { %1595 = vadd.xlane.f32.xlu1 %v1594_v2 }
 0x4e8   :  { %1671 = vperm.xlu1 %1811, %v1667_v5  }
 0x4ec   :  { %1695 = vperm.xlu1 %1811, %v1691_v25  }
 0x4f0   :  { %1700 = vperm.xlu1 %1811, %v1692_v38  }
 0x562   :  { %v1589_v59 = vpop.xlane.xlu0 %1588 }
 0x563   :  { %v1597_v1 = vmul.f32 0.001953125, %v1589_v59 }
 0x564   :  { %v1596_v7 = vpop.xlane.xlu1 %1595 }
 0x565   :  { %v1598_v19 = vmul.f32 0.001953125, %v1596_v7  ;;  %v1599_v28 = vsub.f32 %v1476_v43, %v1597_v1  ;;  %v1600_v30 = vsub.f32 %v1478_v14, %v1597_v1  ;;  %v1601_v6 = vsub.f32 %v1519_v52, %v1597_v1 }
 0x566   :  { %v1602_v18 = vsub.f32 %v1521_v57, %v1597_v1  ;;  %v1603_v33 = vsub.f32 %v1562_v20, %v1597_v1  ;;  %v1604_v17 = vsub.f32 %v1564_v0, %v1597_v1 }
 0x567   :  { %v1611_v42 = vsel %vm782_vm10, %v1599_v28, 0.0  ;;  %v1612_v61 = vsel %vm783_vm11, %v1600_v30, 0.0  ;;  %v2603_v40 = vsub.f32 %v1480_v21, %v1598_v19  ;;  %v1613_v54 = vsel %vm784_vm12, %v1601_v6, 0.0 }
 0x568   :  { %v1623_v4 = vmul.f32 %v1611_v42, %v1611_v42  ;;  %v1624_v41 = vmul.f32 %v1612_v61, %v1612_v61  ;;  %v1614_v13 = vsel %vm785_vm13, %v1602_v18, 0.0  ;;  %v1606_v15 = vsub.f32 %v1482_v3, %v1598_v19  ;;  %v1672_v23 = vpop.permute.xlu1 %1671 }
 0x569   :  { %v1607_v49 = vsub.f32 %v1523_v22, %v1598_v19  ;;  %v1608_v16 = vsub.f32 %v1525_v34, %v1598_v19  ;;  %v1615_v11 = vsel %vm2723_vm7, %v1603_v33, 0.0  ;;  %v1625_v43 = vmul.f32 %v1613_v54, %v1613_v54 }
 0x56a   :  { %v1635_v44 = vadd.f32 %v1624_v41, %v1623_v4  ;;  %v1617_v14 = vsel %vm782_vm10, %v2603_v40, 0.0  ;;  %v1609_v45 = vsub.f32 %v1566_v36, %v1598_v19  ;;  %v1618_v21 = vsel %vm783_vm11, %v1606_v15, 0.0  ;;  %vm2725_vm10 = vmmov %vm2719_vm3 }
 0x56b   :  { %v1619_v24 = vsel %vm784_vm12, %v1607_v49, 0.0  ;;  %v1629_v35 = vmul.f32 %v1617_v14, %v1617_v14  ;;  %v1626_v3 = vmul.f32 %v1614_v13, %v1614_v13  ;;  %v1630_v50 = vmul.f32 %v1618_v21, %v1618_v21  ;;  %vm2726_vm11 = vmmov %vm2720_vm4  ;;  %v1721_v21 = vld [vmem:[#allocation4 + $0x48] sm:$0xff] }
 0x56c   :  { %v1636_v48 = vadd.f32 %v1635_v44, %v1625_v43  ;;  %v1616_v52 = vsel %vm2724_vm8, %v1604_v17, 0.0  ;;  %v1610_v47 = vsub.f32 %v1568_v51, %v1598_v19  ;;  %v1620_v57 = vsel %vm785_vm13, %v1608_v16, 0.0  ;;  %v1696_v38 = vpop.permute.xlu1 %1695 }
 0x56d   :  { %v1627_v10 = vmul.f32 %v1615_v11, %v1615_v11  ;;  %v1631_v9 = vmul.f32 %v1619_v24, %v1619_v24  ;;  %v1642_v22 = vadd.f32 %v1630_v50, %v1629_v35  ;;  %v1621_v12 = vsel %vm2725_vm10, %v1609_v45, 0.0 }
 0x56e   :  { %v1637_v60 = vadd.f32 %v1636_v48, %v1626_v3  ;;  %v1628_v27 = vmul.f32 %v1616_v52, %v1616_v52  ;;  %v1632_v34 = vmul.f32 %v1620_v57, %v1620_v57  ;;  %v1622_v62 = vsel %vm2726_vm11, %v1610_v47, 0.0  ;;  %v1724_v52 = vld [vmem:[#allocation4 + $0x60] sm:$0xff]  ;;  %v1725_v57 = vld [vmem:[#allocation4 + $0x68] sm:$0xff] }
 0x56f   :  { %v1643_v39 = vadd.f32 %v1642_v22, %v1631_v9  ;;  %v1633_v20 = vmul.f32 %v1621_v12, %v1621_v12  ;;  %v1634_v29 = vmul.f32 %v1622_v62, %v1622_v62  ;;  %v1715_v22 = vld [vmem:[#allocation4 + $0x8] sm:$0xff]  ;;  %v1716_v12 = vld [vmem:[#allocation4 + $0x10] sm:$0xff] }
 0x570   :  { %v1638_v26 = vadd.f32 %v1637_v60, %v1627_v10  ;;  %v1701_v50 = vpop.permute.xlu1 %1700  ;;  %v1726_v10 = vld [vmem:[#allocation4 + $0x70] sm:$0xff] }
 0x571   :  { %v1644_v63 = vadd.f32 %v1643_v39, %v1632_v34 }
 0x572   :  { %v1639_v56 = vadd.f32 %v1638_v26, %v1628_v27  ;;  %v1717_v27 = vld [vmem:[#allocation4 + $0x18] sm:$0xff] }
 0x573   :  { %v1645_v0 = vadd.f32 %v1644_v63, %v1633_v20  ;;  %v1719_v20 = vld [vmem:[#allocation4 + $0x28] sm:$0xff]  ;;  %v1720_v63 = vld [vmem:[#allocation4 + $0x30] sm:$0xff] }
 0x574   :  { %1640 = vadd.xlane.f32.xlu0 %v1639_v56  ;;  %v1718_v56 = vld [vmem:[#allocation4 + $0x20] sm:$0xff] }
 0x575   :  { %v1646_v8 = vadd.f32 %v1645_v0, %v1634_v29 }
 0x578   :  { %1647 = vadd.xlane.f32.xlu0 %v1646_v8 }
 0x58e   :  { %1676 = vperm.xlu0 %1812, %v1668_v31  }
 0x601   :  { %v1641_v55 = vpop.xlane.xlu0 %1640 }
 0x602   :  { %v1649_v58 = vmul.f32 0.001953125, %v1641_v55 }
 0x604   :  { %v1651_v36 = vadd.f32 1e-05, %v1649_v58 }
 0x605   :  { %v1648_v53 = vpop.xlane.xlu0 %1647 }
 0x606   :  { %1823 = vrsqrt.f32 %v1651_v36  ;;  %v1650_v32 = vmul.f32 0.001953125, %v1648_v53 }
 0x608   :  { %v1652_v51 = vadd.f32 1e-05, %v1650_v32 }
 0x60a   :  { %1825 = vrsqrt.f32 %v1652_v51 }
 0x610   :  { %v1824_v37 = vpop.eup %1823 }
 0x611   :  { %v1655_v46 = vmul.f32 %v1824_v37, %v1599_v28  ;;  %v1656_v2 = vmul.f32 %v1824_v37, %v1600_v30  ;;  %v1657_v5 = vmul.f32 %v1824_v37, %v1601_v6  ;;  %v1658_v25 = vmul.f32 %v1824_v37, %v1602_v18  ;;  %v1677_v30 = vpop.permute.xlu0 %1676 }
 0x612   :  { %v1659_v59 = vmul.f32 %v1824_v37, %v1603_v33  ;;  %v1660_v1 = vmul.f32 %v1824_v37, %v1604_v17  ;;  %v1722_v33 = vld [vmem:[#allocation4 + $0x50] sm:$0xff]  ;;  %v1723_v17 = vld [vmem:[#allocation4 + $0x58] sm:$0xff] }
 0x613   :  { %v1679_v7 = vmul.f32 %v1672_v23, %v1655_v46  ;;  %v1680_v19 = vmul.f32 %v1672_v23, %v1656_v2  ;;  %v1681_v61 = vmul.f32 %v1672_v23, %v1657_v5  ;;  %v1682_v54 = vmul.f32 %v1672_v23, %v1658_v25 }
 0x614   :  { %v1826_v42 = vpop.eup %1825  ;;  %v1683_v4 = vmul.f32 %v1672_v23, %v1659_v59  ;;  %v1684_v41 = vmul.f32 %v1672_v23, %v1660_v1 }
 0x615   :  { %v1661_v13 = vmul.f32 %v1826_v42, %v2603_v40  ;;  %v1662_v11 = vmul.f32 %v1826_v42, %v1606_v15  ;;  %v1663_v43 = vmul.f32 %v1826_v42, %v1607_v49  ;;  %v1664_v44 = vmul.f32 %v1826_v42, %v1608_v16 }
 0x616   :  { %v1665_v14 = vmul.f32 %v1826_v42, %v1609_v45  ;;  %v1666_v28 = vmul.f32 %v1826_v42, %v1610_v47  ;;  %v1703_v6 = vadd.f32 %v1696_v38, %v1679_v7  ;;  %v1704_v18 = vadd.f32 %v1696_v38, %v1680_v19 }
 0x617   :  { %v1685_v24 = vmul.f32 %v1677_v30, %v1661_v13  ;;  %v1686_v35 = vmul.f32 %v1677_v30, %v1662_v11  ;;  %v1687_v3 = vmul.f32 %v1677_v30, %v1663_v43  ;;  %v1688_v48 = vmul.f32 %v1677_v30, %v1664_v44 }
 0x618   :  { %v1689_v40 = vmul.f32 %v1677_v30, %v1665_v14  ;;  %v1690_v15 = vmul.f32 %v1677_v30, %v1666_v28  ;;  %v1705_v49 = vadd.f32 %v1696_v38, %v1681_v61  ;;  %v1706_v16 = vadd.f32 %v1696_v38, %v1682_v54 }
 0x619   :  { %v1709_v45 = vadd.f32 %v1701_v50, %v1685_v24  ;;  %v1710_v47 = vadd.f32 %v1701_v50, %v1686_v35  ;;  %v1711_v60 = vadd.f32 %v1701_v50, %v1687_v3  ;;  %v1712_v9 = vadd.f32 %v1701_v50, %v1688_v48 }
 0x61a   :  { %v1713_v26 = vadd.f32 %v1701_v50, %v1689_v40  ;;  %v1714_v34 = vadd.f32 %v1701_v50, %v1690_v15  ;;  %v1707_v39 = vadd.f32 %v1696_v38, %v1683_v4  ;;  %v1708_v62 = vadd.f32 %v1696_v38, %v1684_v41 }
 0x61b   :  { %v1733_v29 = vadd.f32 %v1721_v21, %v1709_v45  ;;  %v1734_v0 = vadd.f32 %v1722_v33, %v1710_v47  ;;  %v1735_v8 = vadd.f32 %v1723_v17, %v1711_v60  ;;  %v1736_v31 = vadd.f32 %v1724_v52, %v1712_v9 }
 0x61c   :  { %v1737_v55 = vadd.f32 %v1725_v57, %v1713_v26  ;;  %v1738_v58 = vadd.f32 %v1726_v10, %v1714_v34  ;;  %v1727_v36 = vadd.f32 %v1715_v22, %v1703_v6  ;;  %v1728_v53 = vadd.f32 %v1716_v12, %v1704_v18 }
 0x61d   :  { %1745 = vst [vmem:[#allocation7 + $0x30] sm:$0xff] %v1733_v29  ;;  %1746 = vst [vmem:[#allocation7 + $0x38] sm:$0xff] %v1734_v0  ;;  %v1729_v32 = vadd.f32 %v1717_v27, %v1705_v49  ;;  %v1730_v51 = vadd.f32 %v1718_v56, %v1706_v16  ;;  %v1731_v23 = vadd.f32 %v1719_v20, %v1707_v39 }
 0x61e   :  { %1747 = vst [vmem:[#allocation7 + $0x40] sm:$0xff] %v1735_v8  ;;  %1748 = vst [vmem:[#allocation7 + $0x48] sm:$0xff] %v1736_v31  ;;  %v1732_v37 = vadd.f32 %v1720_v63, %v1708_v62 }
 0x61f   :  { %1749 = vst [vmem:[#allocation7 + $0x50] sm:$0xff] %v1737_v55  ;;  %1750 = vst [vmem:[#allocation7 + $0x58] sm:$0xff] %v1738_v58 }
 0x620   :  { %1739 = vst [vmem:[#allocation7] sm:$0xff] %v1727_v36  ;;  %1740 = vst [vmem:[#allocation7 + $0x8] sm:$0xff] %v1728_v53 }
 0x621   :  { %1741 = vst [vmem:[#allocation7 + $0x10] sm:$0xff] %v1729_v32  ;;  %1742 = vst [vmem:[#allocation7 + $0x18] sm:$0xff] %v1730_v51 }
 0x622   :  { %1743 = vst [vmem:[#allocation7 + $0x20] sm:$0xff] %v1731_v23  ;;  %1744 = vst [vmem:[#allocation7 + $0x28] sm:$0xff] %v1732_v37 }
 0x623   :  { %1860 = shalt.err (!%p1857_p12)
}
 0x624   :  { %s1861_s27 = scalar_lea.hbm %s2650_s8, 1536 }
 0x625   :  { %p1862_p13 = scmp.ne.s32.totalorder %s2650_s8, %s1861_s27  ;;  %p1865_p0 = scmp.lt.u32.totalorder %s1861_s27, %s2650_s8 }
 0x627   :  { %p1867_p1 = pnand %p1865_p0, %p1862_p13 }
 0x629   :  { %1870 = shalt.err (!%p1867_p1)
}
 0x62a   :  { %s1888_s7 = smov 768   ;;  %s1889_s9 = smov 48  }
 0x62b   :  { %1762 = dma.vmem_to_hbm [thread:$0]  %s1757_s23, 1536, %s2650_s8, [#allocation6], %s1888_s7, %s1888_s7, %s1889_s9  }
 0x62c   :  { %1873 = dma.done.wait [#allocation6], 1536  }
 0x62d   :  { %1874 = vsyncadd [#allocation6], 4294965760 }
 0x62e   :  { %1766 = vsyncpa [#allocation5], 1 }
 0x62f   :  { %1767 = vsyncpa [#allocation6], 1 }

</bundles_post_ra>
